<compile_context>
chip_gen: v7x
topology: tpu7x:2x2x1
jax: 0.10.0
libtpu: 0.0.40
codegen_flags: <defaults>
</compile_context>

<pallas_src>
import functools

import jax
import jax.numpy as jnp
from jax.experimental import pallas as pl
from jax.experimental.pallas import tpu as pltpu


# --------------------------------------------------------------------------
# helpers
# --------------------------------------------------------------------------

def _round_up(x, m):
    return (x + m - 1) // m * m


def _tile_and_pad(dim, pref, align):
    """Pick a tile for `dim`:
       - full dim if dim <= pref (full-extent blocks are always layout-legal),
       - else the largest multiple of `align` <= pref that divides dim,
       - else fall back to padding dim up to a multiple of pref (rare)."""
    if dim <= pref:
        return dim, dim
    t = (pref // align) * align
    while t >= align:
        if dim % t == 0:
            return t, dim
        t -= align
    t = (pref // align) * align
    return t, _round_up(dim, t)


# --------------------------------------------------------------------------
# Fused linear: tiled matmul (bf16 MXU operands, f32 K-accumulation) with
# optional element-wise-multiplied second input (SwiGLU fusion), optional
# SiLU epilogue, optional residual add and output scale in the finalize.
# --------------------------------------------------------------------------

def _make_linear_kernel(*, n_x, has_res, act, scale):
    def kernel(*refs):
        x_refs = refs[:n_x]
        w_ref = refs[n_x]
        r_ref = refs[n_x + 1] if has_res else None
        o_ref = refs[-2]
        acc_ref = refs[-1]

        @pl.when(pl.program_id(2) == 0)
        def _init():
            acc_ref[...] = jnp.zeros_like(acc_ref)

        x = x_refs[0][...]
        if n_x == 2:
            # SwiGLU fusion: multiply gate * up per K-tile, feed the MXU in bf16.
            x = (x.astype(jnp.float32)
                 * x_refs[1][...].astype(jnp.float32)).astype(jnp.bfloat16)
        acc_ref[...] += jnp.dot(x, w_ref[...],
                                preferred_element_type=jnp.float32)

        @pl.when(pl.program_id(2) == pl.num_programs(2) - 1)
        def _finalize():
            r = acc_ref[...]
            if act == "silu":
                r = r * jax.nn.sigmoid(r)          # EUP, f32
            if scale != 1.0:
                r = r * scale
            if has_res:
                r = r + r_ref[...].astype(jnp.float32)
            o_ref[...] = r.astype(o_ref.dtype)

    return kernel


def linear(x, w, *, x_mul=None, residual=None, act=None, scale=1.0,
           out_dtype=jnp.float32, tm=256, tn=512, tk=512):
    """(x [* x_mul]) @ w  [+ residual], with optional SiLU / scale epilogue.

    x, x_mul: (M, K); w: (K, N); residual: (M, N).  MXU operands are bf16,
    accumulation f32.  Tiles are v7x-safe; on v5e/v6e (128 MiB VMEM) tn/tk can
    be raised to 1024-2048 for the big vocab matmul.
    """
    M, K = x.shape
    K2, N = w.shape
    assert K == K2
    tm, Mp = _tile_and_pad(M, tm, 16)
    tk, Kp = _tile_and_pad(K, tk, 128)
    tn, Np = _tile_and_pad(N, tn, 128)

    def prep(a, rows, cols, dtype):
        a = a.astype(dtype)
        if a.shape != (rows, cols):
            a = jnp.pad(a, ((0, rows - a.shape[0]), (0, cols - a.shape[1])))
        return a

    args = [prep(x, Mp, Kp, jnp.bfloat16)]
    in_specs = [pl.BlockSpec((tm, tk), lambda i, j, k: (i, k))]
    n_x = 1
    if x_mul is not None:
        args.append(prep(x_mul, Mp, Kp, jnp.bfloat16))
        in_specs.append(pl.BlockSpec((tm, tk), lambda i, j, k: (i, k)))
        n_x = 2
    args.append(prep(w, Kp, Np, jnp.bfloat16))
    in_specs.append(pl.BlockSpec((tk, tn), lambda i, j, k: (k, j)))
    has_res = residual is not None
    if has_res:
        args.append(prep(residual, Mp, Np, residual.dtype))
        in_specs.append(pl.BlockSpec((tm, tn), lambda i, j, k: (i, j)))

    kernel = _make_linear_kernel(n_x=n_x, has_res=has_res, act=act, scale=scale)
    out = pl.pallas_call(
        kernel,
        out_shape=jax.ShapeDtypeStruct((Mp, Np), out_dtype),
        grid=(Mp // tm, Np // tn, Kp // tk),
        in_specs=in_specs,
        out_specs=pl.BlockSpec((tm, tn), lambda i, j, k: (i, j)),
        scratch_shapes=[pltpu.VMEM((tm, tn), jnp.float32)],
        compiler_params=pltpu.CompilerParams(
            dimension_semantics=("parallel", "parallel", "arbitrary"),
            vmem_limit_bytes=48 * 1024 * 1024),
    )(*args)
    if (Mp, Np) != (M, N):
        out = out[:M, :N]
    return out


# --------------------------------------------------------------------------
# RMSNorm (row-tiled, bf16 output for matmul consumers)
# --------------------------------------------------------------------------

def _rmsnorm_kernel(x_ref, w_ref, o_ref, *, eps):
    x = x_ref[...].astype(jnp.float32)
    var = jnp.mean(x * x, axis=-1, keepdims=True)
    o_ref[...] = (x * jax.lax.rsqrt(var + eps) * w_ref[...]).astype(o_ref.dtype)


def rmsnorm(x, w, *, eps=1e-6, out_dtype=jnp.bfloat16, tm=256):
    M, H = x.shape
    tm, Mp = _tile_and_pad(M, tm, 8)
    xp = x if Mp == M else jnp.pad(x, ((0, Mp - M), (0, 0)))
    out = pl.pallas_call(
        functools.partial(_rmsnorm_kernel, eps=eps),
        out_shape=jax.ShapeDtypeStruct((Mp, H), out_dtype),
        grid=(Mp // tm,),
        in_specs=[pl.BlockSpec((tm, H), lambda i: (i, 0)),
                  pl.BlockSpec((1, H), lambda i: (0, 0))],
        out_specs=pl.BlockSpec((tm, H), lambda i: (i, 0)),
        compiler_params=pltpu.CompilerParams(
            dimension_semantics=("parallel",)),
    )(xp, w.reshape(1, H))
    return out if Mp == M else out[:M]


# --------------------------------------------------------------------------
# Flash causal attention, grid = (batch, head, kv_block), RoPE in-kernel
# --------------------------------------------------------------------------

def _flash_attn_kernel(q_ref, k_ref, v_ref, cq_ref, sq_ref, ck_ref, sk_ref,
                       o_ref, qs_ref, m_ref, l_ref, acc_ref,
                       *, tkv, scale, use_roll):
    kv = pl.program_id(2)
    S, Dh = qs_ref.shape
    half = Dh // 2

    def rot(x):
        # unsigned rotate-half; the sign lives in the precomputed sin table
        if use_roll:
            return pltpu.roll(x, shift=half, axis=-1)     # XLU slot
        return jnp.concatenate([x[:, half:], x[:, :half]], axis=-1)

    @pl.when(kv == 0)
    def _init():
        q = q_ref[0, 0].astype(jnp.float32)
        qs_ref[...] = ((q * cq_ref[...] + rot(q) * sq_ref[...])
                       * scale).astype(jnp.bfloat16)       # scale q, not SxS scores
        m_ref[...] = jnp.full_like(m_ref, -1e30)            # finite: no inf-inf NaNs
        l_ref[...] = jnp.zeros_like(l_ref)
        acc_ref[...] = jnp.zeros_like(acc_ref)

    k = k_ref[0, 0].astype(jnp.float32)
    kr = (k * ck_ref[...] + rot(k) * sk_ref[...]).astype(jnp.bfloat16)

    s = jnp.dot(qs_ref[...], kr.T, preferred_element_type=jnp.float32)  # (S, tkv)
    row = jax.lax.broadcasted_iota(jnp.int32, (S, tkv), 0)
    col = jax.lax.broadcasted_iota(jnp.int32, (S, tkv), 1) + kv * tkv
    s = jnp.where(col <= row, s, -1e30)

    m_prev = m_ref[...]
    m_new = jnp.maximum(m_prev, jnp.max(s, axis=-1, keepdims=True))
    alpha = jnp.exp(m_prev - m_new)
    p = jnp.exp(s - m_new)
    l_ref[...] = alpha * l_ref[...] + jnp.sum(p, axis=-1, keepdims=True)
    acc_ref[...] = alpha * acc_ref[...] + jnp.dot(
        p.astype(jnp.bfloat16), v_ref[0, 0], preferred_element_type=jnp.float32)
    m_ref[...] = m_new

    @pl.when(kv == pl.num_programs(2) - 1)
    def _finalize():
        # reciprocal applied to the (S, Dh) accumulator, not the (S, S) probs
        o_ref[0, 0] = (acc_ref[...]
                       * pl.reciprocal(l_ref[...], approx=True)).astype(o_ref.dtype)


def flash_attention(q, k, v, cos, sin_signed, *, tkv=512):
    """q, k, v: (B, NH, S, Dh) bf16; returns (B, NH, S, Dh) bf16.

    Grid = (B, NH, S // tkv); B and NH are 'parallel' (megacore friendly), the
    KV axis accumulates via VMEM scratch (online softmax).
    """
    B, NH, S, Dh = q.shape
    scale = 1.0 / (Dh ** 0.5)
    tkv, Sp = _tile_and_pad(S, tkv, 128)
    if Sp != S:
        tkv = S  # TODO(synk): mask ragged KV tails instead of a full-S block
    use_roll = (Dh % 128 == 0)  # real configs; small demo falls back to concat

    kernel = functools.partial(_flash_attn_kernel, tkv=tkv, scale=scale,
                               use_roll=use_roll)
    # TODO(synk): for very long S, add a Q-block grid axis as well so the q /
    # accumulator working set is O(tq * Dh) instead of O(S * Dh).
    return pl.pallas_call(
        kernel,
        out_shape=jax.ShapeDtypeStruct((B, NH, S, Dh), jnp.bfloat16),
        grid=(B, NH, S // tkv),
        in_specs=[
            pl.BlockSpec((1, 1, S, Dh), lambda b, h, kv: (b, h, 0, 0)),    # q
            pl.BlockSpec((1, 1, tkv, Dh), lambda b, h, kv: (b, h, kv, 0)),  # k
            pl.BlockSpec((1, 1, tkv, Dh), lambda b, h, kv: (b, h, kv, 0)),  # v
            pl.BlockSpec((S, Dh), lambda b, h, kv: (0, 0)),                 # cos (q rows)
            pl.BlockSpec((S, Dh), lambda b, h, kv: (0, 0)),                 # sin (q rows)
            pl.BlockSpec((tkv, Dh), lambda b, h, kv: (kv, 0)),              # cos (k rows)
            pl.BlockSpec((tkv, Dh), lambda b, h, kv: (kv, 0)),              # sin (k rows)
        ],
        out_specs=pl.BlockSpec((1, 1, S, Dh), lambda b, h, kv: (b, h, 0, 0)),
        scratch_shapes=[
            pltpu.VMEM((S, Dh), jnp.bfloat16),   # rope(q) * scale
            pltpu.VMEM((S, 1), jnp.float32),     # running max
            pltpu.VMEM((S, 1), jnp.float32),     # running denom
            pltpu.VMEM((S, Dh), jnp.float32),    # output accumulator
        ],
        compiler_params=pltpu.CompilerParams(
            dimension_semantics=("parallel", "parallel", "arbitrary"),
            vmem_limit_bytes=48 * 1024 * 1024),
    )(q, k, v, cos, sin_signed, cos, sin_signed)


# --------------------------------------------------------------------------
# RoPE tables (sign of rotate-half folded into the sin table)
# --------------------------------------------------------------------------

def make_rope(seq_len, head_dim, theta=10000.0):
    inv_freq = 1.0 / (theta ** (jnp.arange(0, head_dim, 2, dtype=jnp.float32)
                                / head_dim))
    pos = jnp.arange(seq_len, dtype=jnp.float32)
    freqs = pos[:, None] * inv_freq[None, :]                 # (S, Dh/2)
    emb = jnp.concatenate([freqs, freqs], axis=-1)           # (S, Dh)
    cos = jnp.cos(emb)
    sin = jnp.sin(emb)
    half = head_dim // 2
    sin_signed = jnp.concatenate([-sin[:, :half], sin[:, half:]], axis=-1)
    return cos, sin_signed


# --------------------------------------------------------------------------
# Llama decoder layer (glue around the kernels; residual stream stays f32)
# --------------------------------------------------------------------------

def decoder_layer(x_res, p, cos, sin_s, n_heads, B, S):
    M, H = x_res.shape
    Dh = H // n_heads

    # --- self-attention block ---
    h = rmsnorm(x_res, p["ln1"], out_dtype=jnp.bfloat16)
    qkv = linear(h, p["wqkv"], out_dtype=jnp.bfloat16)                 # (M, 3H) bf16
    qkv = qkv.reshape(B, S, 3, n_heads, Dh)
    q = jnp.transpose(qkv[:, :, 0], (0, 2, 1, 3))                      # (B, NH, S, Dh)
    k = jnp.transpose(qkv[:, :, 1], (0, 2, 1, 3))
    v = jnp.transpose(qkv[:, :, 2], (0, 2, 1, 3))
    attn = flash_attention(q, k, v, cos, sin_s)                        # bf16
    attn = jnp.transpose(attn, (0, 2, 1, 3)).reshape(M, H)             # bf16
    # o-projection with the residual add fused into the finalize
    x_res = linear(attn, p["wo"], residual=x_res, out_dtype=jnp.float32)

    # --- MLP block: silu(gate) fused into gate linear, (g*u) and residual
    #     fused into the down-projection (no (M, I) SwiGLU buffer in HBM) ---
    h2 = rmsnorm(x_res, p["ln2"], out_dtype=jnp.bfloat16)
    g = linear(h2, p["wg"], act="silu", out_dtype=jnp.bfloat16)
    u = linear(h2, p["wu"], out_dtype=jnp.bfloat16)
    x_res = linear(g, p["wd"], x_mul=u, residual=x_res, out_dtype=jnp.float32)
    return x_res


# --------------------------------------------------------------------------
# Parameter init (deterministic, synthetic — no checkpoint)
# Matmul weights stored in bf16 (MXU operands); norm weights / embeddings f32.
# --------------------------------------------------------------------------

def init_layer_params(key, H, I):
    ks = jax.random.split(key, 5)
    std = 0.02

    def w(k, shape):
        return (std * jax.random.normal(k, shape, jnp.float32)).astype(jnp.bfloat16)

    return {
        "ln1": jnp.ones((H,), jnp.float32),
        "wqkv": w(ks[0], (H, 3 * H)),
        "wo": w(ks[1], (H, H)),
        "ln2": jnp.ones((H,), jnp.float32),
        "wg": w(ks[2], (H, I)),
        "wu": w(ks[3], (H, I)),
        "wd": w(ks[4], (I, H)),
    }


def init_treenet_params(key, *, vocab, H, I, shared_count, blocks_in_head, heads):
    k_emb, k_bb, k_heads = jax.random.split(key, 3)
    params = {
        "embed": 0.02 * jax.random.normal(k_emb, (vocab, H), jnp.float32),
        "backbone_layers": [
            init_layer_params(k, H, I)
            for k in jax.random.split(k_bb, shared_count)
        ],
        "heads": [],
    }
    lm_heads = []
    for kh in jax.random.split(k_heads, heads):
        k_layers, _k_norm, k_lm = jax.random.split(kh, 3)
        params["heads"].append({
            "layers": [init_layer_params(k, H, I)
                       for k in jax.random.split(k_layers, blocks_in_head)],
            "norm": jnp.ones((H,), jnp.float32),
        })
        lm_heads.append((0.02 * jax.random.normal(k_lm, (H, vocab), jnp.float32)
                         ).astype(jnp.bfloat16))
    # Pre-concatenate per-head lm_heads along rows so the head-average is a
    # single K-accumulated matmul at forward time (mean folded into scale).
    params["lm_head_cat"] = jnp.concatenate(lm_heads, axis=0)   # (heads*H, V) bf16
    return params


# --------------------------------------------------------------------------
# TreeNetLlama forward
# --------------------------------------------------------------------------

def treenet_forward(params, input_ids, *, n_heads_attn):
    B, S = input_ids.shape
    H = params["embed"].shape[1]
    Dh = H // n_heads_attn
    cos, sin_s = make_rope(S, Dh)

    # backbone: embed_tokens + shared layers, norm = Identity
    x = jnp.take(params["embed"], input_ids, axis=0).reshape(B * S, H)  # f32
    for lp in params["backbone_layers"]:
        x = decoder_layer(x, lp, cos, sin_s, n_heads_attn, B, S)

    # heads: remaining layers + RMSNorm (bf16); per-head lm_head + mean folded
    # into ONE K-accumulated matmul:
    #   mean_h(h2_h @ W_h) = concat_h(h2_h, axis=1) @ concat_h(W_h, axis=0) / heads
    normed = []
    for hp in params["heads"]:
        h = x
        for lp in hp["layers"]:
            h = decoder_layer(h, lp, cos, sin_s, n_heads_attn, B, S)
        normed.append(rmsnorm(h, hp["norm"], out_dtype=jnp.bfloat16))

    n_tree = len(params["heads"])
    x_cat = jnp.concatenate(normed, axis=1)                    # (B*S, heads*H) bf16
    logits = linear(x_cat, params["lm_head_cat"],
                    out_dtype=jnp.float32, scale=1.0 / n_tree)
    return logits.reshape(B, S, -1)                            # (B, S, vocab)


# --------------------------------------------------------------------------
# Main
# --------------------------------------------------------------------------

if __name__ == "__main__":
    # small Llama-style config
    VOCAB = 128
    H = 32            # hidden_size
    I = 64            # intermediate_size
    N_HEADS = 4       # attention heads  (head_dim = 8)
    TOTAL_LAYERS = 4
    BLOCKS_IN_HEAD = 2
    SHARED = TOTAL_LAYERS - BLOCKS_IN_HEAD   # 2
    HEADS = 3         # number of TreeNet heads
    B, S = 2, 8

    root = jax.random.PRNGKey(0)
    k_params, k_ids = jax.random.split(root)
    params = init_treenet_params(
        k_params, vocab=VOCAB, H=H, I=I,
        shared_count=SHARED, blocks_in_head=BLOCKS_IN_HEAD, heads=HEADS)

    input_ids = jax.random.randint(k_ids, (B, S), 0, VOCAB, dtype=jnp.int32)

    fwd = jax.jit(functools.partial(treenet_forward, n_heads_attn=N_HEADS))
    out = jax.block_until_ready(fwd(params, input_ids))
    assert out.shape == (B, S, VOCAB)
    assert bool(jnp.all(jnp.isfinite(out)))
    print("KERNEL_OK")
</pallas_src>

<mosaic_0001>
module attributes {stable_mosaic.version = 11 : i64} {
  func.func @_rmsnorm_kernel(%arg0: i32, %arg1: memref<16x32xf32, #tpu.memory_space<vmem>>, %arg2: memref<1x32xf32, #tpu.memory_space<vmem>>, %arg3: memref<16x32xbf16, #tpu.memory_space<vmem>>) attributes {dimension_semantics = [#tpu.dimension_semantics<parallel>], iteration_bounds = array<i64: 1>, scalar_prefetch = 0 : i64, scratch_operands = 0 : i64, tpu.core_type = #tpu.core_type<tc>, window_params = [{transform_indices = @transform_0, window_bounds = array<i64: 16, 32>}, {pipeline_mode = #tpu.pipeline_mode<synchronous>, transform_indices = @transform_1, window_bounds = array<i64: 1, 32>}, {transform_indices = @transform_2, window_bounds = array<i64: 16, 32>}]} {
    %c0 = arith.constant 0 : index
    %c0_0 = arith.constant 0 : index
    %0 = vector.load %arg1[%c0, %c0_0] : memref<16x32xf32, #tpu.memory_space<vmem>>, vector<16x32xf32>
    %1 = arith.mulf %0, %0 : vector<16x32xf32>
    %cst = arith.constant dense<0.000000e+00> : vector<16xf32>
    %2 = vector.multi_reduction <add>, %1, %cst [1] : vector<16x32xf32> to vector<16xf32>
    %3 = vector.shape_cast %2 : vector<16xf32> to vector<16x1xf32>
    %cst_1 = arith.constant 3.200000e+01 : f32
    %4 = vector.broadcast %cst_1 : f32 to vector<16x1xf32>
    %5 = arith.divf %3, %4 : vector<16x1xf32>
    %cst_2 = arith.constant 9.99999997E-7 : f32
    %6 = vector.broadcast %cst_2 : f32 to vector<16x1xf32>
    %7 = arith.addf %5, %6 : vector<16x1xf32>
    %8 = math.rsqrt %7 : vector<16x1xf32>
    %9 = vector.broadcast %8 : vector<16x1xf32> to vector<16x32xf32>
    %10 = arith.mulf %0, %9 : vector<16x32xf32>
    %c0_3 = arith.constant 0 : index
    %c0_4 = arith.constant 0 : index
    %11 = vector.load %arg2[%c0_3, %c0_4] : memref<1x32xf32, #tpu.memory_space<vmem>>, vector<1x32xf32>
    %12 = vector.broadcast %11 : vector<1x32xf32> to vector<16x32xf32>
    %13 = arith.mulf %10, %12 : vector<16x32xf32>
    %14 = arith.truncf %13 : vector<16x32xf32> to vector<16x32xbf16>
    %c0_5 = arith.constant 0 : index
    %c0_6 = arith.constant 0 : index
    %15 = vector.load %arg3[%c0_5, %c0_6] : memref<16x32xbf16, #tpu.memory_space<vmem>>, vector<16x32xbf16>
    tpu.vector_store %arg3[%c0_5, %c0_6], %14 {strides = array<i32>} : memref<16x32xbf16, #tpu.memory_space<vmem>>, vector<16x32xbf16>,
    return
  }
  func.func @transform_0(%arg0: i32) -> (i32, i32) {
    %c0_i32 = arith.constant 0 : i32
    %c0_i32_0 = arith.constant 0 : i32
    return %arg0, %c0_i32 : i32, i32
  }
  func.func @transform_1(%arg0: i32) -> (i32, i32) {
    %c0_i32 = arith.constant 0 : i32
    %c0_i32_0 = arith.constant 0 : i32
    %c0_i32_1 = arith.constant 0 : i32
    return %c0_i32, %c0_i32_0 : i32, i32
  }
  func.func @transform_2(%arg0: i32) -> (i32, i32) {
    %c0_i32 = arith.constant 0 : i32
    %c0_i32_0 = arith.constant 0 : i32
    return %arg0, %c0_i32 : i32, i32
  }
}

module attributes {stable_mosaic.version = 11 : i64} {
  func.func @kernel(%arg0: i32, %arg1: i32, %arg2: i32, %arg3: memref<16x32xbf16, #tpu.memory_space<vmem>>, %arg4: memref<32x96xbf16, #tpu.memory_space<vmem>>, %arg5: memref<16x96xbf16, #tpu.memory_space<vmem>>, %arg6: memref<16x96xf32, #tpu.memory_space<vmem>>) attributes {dimension_semantics = [#tpu.dimension_semantics<parallel>, #tpu.dimension_semantics<parallel>, #tpu.dimension_semantics<arbitrary>], iteration_bounds = array<i64: 1, 1, 1>, scalar_prefetch = 0 : i64, scratch_operands = 1 : i64, tpu.core_type = #tpu.core_type<tc>, window_params = [{transform_indices = @transform_0, window_bounds = array<i64: 16, 32>}, {transform_indices = @transform_1, window_bounds = array<i64: 32, 96>}, {transform_indices = @transform_2, window_bounds = array<i64: 16, 96>}]} {
    %c0_i32 = arith.constant 0 : i32
    %0 = arith.cmpi eq, %arg2, %c0_i32 : i32
    %1 = arith.extui %0 : i1 to i32
    %c0_i32_0 = arith.constant 0 : i32
    %2 = arith.cmpi ne, %1, %c0_i32_0 : i32
    scf.if %2 {
      %cst_10 = arith.constant 0.000000e+00 : f32
      %12 = vector.broadcast %cst_10 : f32 to vector<16x96xf32>
      %c0_11 = arith.constant 0 : index
      %c0_12 = arith.constant 0 : index
      %13 = vector.load %arg6[%c0_11, %c0_12] : memref<16x96xf32, #tpu.memory_space<vmem>>, vector<16x96xf32>
      tpu.vector_store %arg6[%c0_11, %c0_12], %12 {strides = array<i32>} : memref<16x96xf32, #tpu.memory_space<vmem>>, vector<16x96xf32>,
    } else {
    }
    %c0 = arith.constant 0 : index
    %c0_1 = arith.constant 0 : index
    %3 = vector.load %arg3[%c0, %c0_1] : memref<16x32xbf16, #tpu.memory_space<vmem>>, vector<16x32xbf16>
    %c0_2 = arith.constant 0 : index
    %c0_3 = arith.constant 0 : index
    %4 = vector.load %arg6[%c0_2, %c0_3] : memref<16x96xf32, #tpu.memory_space<vmem>>, vector<16x96xf32>
    %c0_4 = arith.constant 0 : index
    %c0_5 = arith.constant 0 : index
    %5 = vector.load %arg4[%c0_4, %c0_5] : memref<32x96xbf16, #tpu.memory_space<vmem>>, vector<32x96xbf16>
    %cst = arith.constant dense<0.000000e+00> : vector<16x96xf32>
    %6 = tpu.matmul %3, %5, %cst {dimension_numbers = #tpu.dot_dimension_numbers<[1], [0], [0], [1], [0, 0, 1, 1], [], []>} : vector<16x32xbf16>, vector<32x96xbf16>, vector<16x96xf32> -> vector<16x96xf32>
    %7 = arith.addf %4, %6 : vector<16x96xf32>
    %c0_6 = arith.constant 0 : index
    %c0_7 = arith.constant 0 : index
    %8 = vector.load %arg6[%c0_6, %c0_7] : memref<16x96xf32, #tpu.memory_space<vmem>>, vector<16x96xf32>
    tpu.vector_store %arg6[%c0_6, %c0_7], %7 {strides = array<i32>} : memref<16x96xf32, #tpu.memory_space<vmem>>, vector<16x96xf32>,
    %c0_i32_8 = arith.constant 0 : i32
    %9 = arith.cmpi eq, %arg2, %c0_i32_8 : i32
    %10 = arith.extui %9 : i1 to i32
    %c0_i32_9 = arith.constant 0 : i32
    %11 = arith.cmpi ne, %10, %c0_i32_9 : i32
    scf.if %11 {
      %c0_10 = arith.constant 0 : index
      %c0_11 = arith.constant 0 : index
      %12 = vector.load %arg6[%c0_10, %c0_11] : memref<16x96xf32, #tpu.memory_space<vmem>>, vector<16x96xf32>
      %13 = arith.truncf %12 : vector<16x96xf32> to vector<16x96xbf16>
      %c0_12 = arith.constant 0 : index
      %c0_13 = arith.constant 0 : index
      %14 = vector.load %arg5[%c0_12, %c0_13] : memref<16x96xbf16, #tpu.memory_space<vmem>>, vector<16x96xbf16>
      tpu.vector_store %arg5[%c0_12, %c0_13], %13 {strides = array<i32>} : memref<16x96xbf16, #tpu.memory_space<vmem>>, vector<16x96xbf16>,
    } else {
    }
    return
  }
  func.func @transform_0(%arg0: i32, %arg1: i32, %arg2: i32) -> (i32, i32) {
    %c0_i32 = arith.constant 0 : i32
    return %arg0, %arg2 : i32, i32
  }
  func.func @transform_1(%arg0: i32, %arg1: i32, %arg2: i32) -> (i32, i32) {
    %c0_i32 = arith.constant 0 : i32
    return %arg2, %arg1 : i32, i32
  }
  func.func @transform_2(%arg0: i32, %arg1: i32, %arg2: i32) -> (i32, i32) {
    %c0_i32 = arith.constant 0 : i32
    return %arg0, %arg1 : i32, i32
  }
}

module attributes {stable_mosaic.version = 11 : i64} {
  func.func @kernel(%arg0: i32, %arg1: i32, %arg2: i32, %arg3: memref<16x32xbf16, #tpu.memory_space<vmem>>, %arg4: memref<32x64xbf16, #tpu.memory_space<vmem>>, %arg5: memref<16x64xbf16, #tpu.memory_space<vmem>>, %arg6: memref<16x64xf32, #tpu.memory_space<vmem>>) attributes {dimension_semantics = [#tpu.dimension_semantics<parallel>, #tpu.dimension_semantics<parallel>, #tpu.dimension_semantics<arbitrary>], iteration_bounds = array<i64: 1, 1, 1>, scalar_prefetch = 0 : i64, scratch_operands = 1 : i64, tpu.core_type = #tpu.core_type<tc>, window_params = [{transform_indices = @transform_0, window_bounds = array<i64: 16, 32>}, {transform_indices = @transform_1, window_bounds = array<i64: 32, 64>}, {transform_indices = @transform_2, window_bounds = array<i64: 16, 64>}]} {
    %c0_i32 = arith.constant 0 : i32
    %0 = arith.cmpi eq, %arg2, %c0_i32 : i32
    %1 = arith.extui %0 : i1 to i32
    %c0_i32_0 = arith.constant 0 : i32
    %2 = arith.cmpi ne, %1, %c0_i32_0 : i32
    scf.if %2 {
      %cst_10 = arith.constant 0.000000e+00 : f32
      %12 = vector.broadcast %cst_10 : f32 to vector<16x64xf32>
      %c0_11 = arith.constant 0 : index
      %c0_12 = arith.constant 0 : index
      %13 = vector.load %arg6[%c0_11, %c0_12] : memref<16x64xf32, #tpu.memory_space<vmem>>, vector<16x64xf32>
      tpu.vector_store %arg6[%c0_11, %c0_12], %12 {strides = array<i32>} : memref<16x64xf32, #tpu.memory_space<vmem>>, vector<16x64xf32>,
    } else {
    }
    %c0 = arith.constant 0 : index
    %c0_1 = arith.constant 0 : index
    %3 = vector.load %arg3[%c0, %c0_1] : memref<16x32xbf16, #tpu.memory_space<vmem>>, vector<16x32xbf16>
    %c0_2 = arith.constant 0 : index
    %c0_3 = arith.constant 0 : index
    %4 = vector.load %arg6[%c0_2, %c0_3] : memref<16x64xf32, #tpu.memory_space<vmem>>, vector<16x64xf32>
    %c0_4 = arith.constant 0 : index
    %c0_5 = arith.constant 0 : index
    %5 = vector.load %arg4[%c0_4, %c0_5] : memref<32x64xbf16, #tpu.memory_space<vmem>>, vector<32x64xbf16>
    %cst = arith.constant dense<0.000000e+00> : vector<16x64xf32>
    %6 = tpu.matmul %3, %5, %cst {dimension_numbers = #tpu.dot_dimension_numbers<[1], [0], [0], [1], [0, 0, 1, 1], [], []>} : vector<16x32xbf16>, vector<32x64xbf16>, vector<16x64xf32> -> vector<16x64xf32>
    %7 = arith.addf %4, %6 : vector<16x64xf32>
    %c0_6 = arith.constant 0 : index
    %c0_7 = arith.constant 0 : index
    %8 = vector.load %arg6[%c0_6, %c0_7] : memref<16x64xf32, #tpu.memory_space<vmem>>, vector<16x64xf32>
    tpu.vector_store %arg6[%c0_6, %c0_7], %7 {strides = array<i32>} : memref<16x64xf32, #tpu.memory_space<vmem>>, vector<16x64xf32>,
    %c0_i32_8 = arith.constant 0 : i32
    %9 = arith.cmpi eq, %arg2, %c0_i32_8 : i32
    %10 = arith.extui %9 : i1 to i32
    %c0_i32_9 = arith.constant 0 : i32
    %11 = arith.cmpi ne, %10, %c0_i32_9 : i32
    scf.if %11 {
      %c0_10 = arith.constant 0 : index
      %c0_11 = arith.constant 0 : index
      %12 = vector.load %arg6[%c0_10, %c0_11] : memref<16x64xf32, #tpu.memory_space<vmem>>, vector<16x64xf32>
      %13 = arith.negf %12 : vector<16x64xf32>
      %14 = math.exp %13 : vector<16x64xf32>
      %cst_12 = arith.constant 1.000000e+00 : f32
      %15 = vector.broadcast %cst_12 : f32 to vector<16x64xf32>
      %16 = arith.addf %15, %14 : vector<16x64xf32>
      %17 = arith.divf %15, %16 : vector<16x64xf32>
      %18 = arith.mulf %12, %17 : vector<16x64xf32>
      %19 = arith.truncf %18 : vector<16x64xf32> to vector<16x64xbf16>
      %c0_13 = arith.constant 0 : index
      %c0_14 = arith.constant 0 : index
      %20 = vector.load %arg5[%c0_13, %c0_14] : memref<16x64xbf16, #tpu.memory_space<vmem>>, vector<16x64xbf16>
      tpu.vector_store %arg5[%c0_13, %c0_14], %19 {strides = array<i32>} : memref<16x64xbf16, #tpu.memory_space<vmem>>, vector<16x64xbf16>,
    } else {
    }
    return
  }
  func.func @transform_0(%arg0: i32, %arg1: i32, %arg2: i32) -> (i32, i32) {
    %c0_i32 = arith.constant 0 : i32
    return %arg0, %arg2 : i32, i32
  }
  func.func @transform_1(%arg0: i32, %arg1: i32, %arg2: i32) -> (i32, i32) {
    %c0_i32 = arith.constant 0 : i32
    return %arg2, %arg1 : i32, i32
  }
  func.func @transform_2(%arg0: i32, %arg1: i32, %arg2: i32) -> (i32, i32) {
    %c0_i32 = arith.constant 0 : i32
    return %arg0, %arg1 : i32, i32
  }
}

module attributes {stable_mosaic.version = 11 : i64} {
  func.func @_flash_attn_kernel(%arg0: i32, %arg1: i32, %arg2: i32, %arg3: memref<1x1x8x8xbf16, #tpu.memory_space<vmem>>, %arg4: memref<1x1x8x8xbf16, #tpu.memory_space<vmem>>, %arg5: memref<1x1x8x8xbf16, #tpu.memory_space<vmem>>, %arg6: memref<8x8xf32, #tpu.memory_space<vmem>>, %arg7: memref<8x8xf32, #tpu.memory_space<vmem>>, %arg8: memref<8x8xf32, #tpu.memory_space<vmem>>, %arg9: memref<8x8xf32, #tpu.memory_space<vmem>>, %arg10: memref<1x1x8x8xbf16, #tpu.memory_space<vmem>>, %arg11: memref<8x8xbf16, #tpu.memory_space<vmem>>, %arg12: memref<8x1xf32, #tpu.memory_space<vmem>>, %arg13: memref<8x1xf32, #tpu.memory_space<vmem>>, %arg14: memref<8x8xf32, #tpu.memory_space<vmem>>) attributes {dimension_semantics = [#tpu.dimension_semantics<parallel>, #tpu.dimension_semantics<parallel>, #tpu.dimension_semantics<arbitrary>], iteration_bounds = array<i64: 2, 4, 1>, scalar_prefetch = 0 : i64, scratch_operands = 4 : i64, tpu.core_type = #tpu.core_type<tc>, window_params = [{transform_indices = @transform_0, window_bounds = array<i64: 1, 1, 8, 8>}, {transform_indices = @transform_1, window_bounds = array<i64: 1, 1, 8, 8>}, {transform_indices = @transform_2, window_bounds = array<i64: 1, 1, 8, 8>}, {pipeline_mode = #tpu.pipeline_mode<synchronous>, transform_indices = @transform_3, window_bounds = array<i64: 8, 8>}, {pipeline_mode = #tpu.pipeline_mode<synchronous>, transform_indices = @transform_4, window_bounds = array<i64: 8, 8>}, {transform_indices = @transform_5, window_bounds = array<i64: 8, 8>}, {transform_indices = @transform_6, window_bounds = array<i64: 8, 8>}, {transform_indices = @transform_7, window_bounds = array<i64: 1, 1, 8, 8>}]} {
    %c0_i32 = arith.constant 0 : i32
    %0 = arith.cmpi eq, %arg2, %c0_i32 : i32
    %1 = arith.extui %0 : i1 to i32
    %c0_i32_0 = arith.constant 0 : i32
    %2 = arith.cmpi ne, %1, %c0_i32_0 : i32
    scf.if %2 {
      %c0_32 = arith.constant 0 : index
      %c0_33 = arith.constant 0 : index
      %c0_34 = arith.constant 0 : index
      %c0_35 = arith.constant 0 : index
      %54 = vector.load %arg3[%c0_32, %c0_33, %c0_34, %c0_35] : memref<1x1x8x8xbf16, #tpu.memory_space<vmem>>, vector<1x1x8x8xbf16>
      %55 = vector.shape_cast %54 : vector<1x1x8x8xbf16> to vector<8x8xbf16>
      %56 = arith.extf %55 : vector<8x8xbf16> to vector<8x8xf32>
      %c0_36 = arith.constant 0 : index
      %c0_37 = arith.constant 0 : index
      %57 = vector.load %arg6[%c0_36, %c0_37] : memref<8x8xf32, #tpu.memory_space<vmem>>, vector<8x8xf32>
      %58 = arith.mulf %56, %57 : vector<8x8xf32>
      %59 = vector.extract_strided_slice %56 {offsets = [0, 4], sizes = [8, 4], strides = [1, 1]} : vector<8x8xf32> to vector<8x4xf32>
      %60 = vector.extract_strided_slice %56 {offsets = [0, 0], sizes = [8, 4], strides = [1, 1]} : vector<8x8xf32> to vector<8x4xf32>
      %61 = tpu.concatenate %59, %60 in 1 : vector<8x4xf32>, vector<8x4xf32> -> vector<8x8xf32>
      %c0_38 = arith.constant 0 : index
      %c0_39 = arith.constant 0 : index
      %62 = vector.load %arg7[%c0_38, %c0_39] : memref<8x8xf32, #tpu.memory_space<vmem>>, vector<8x8xf32>
      %63 = arith.mulf %61, %62 : vector<8x8xf32>
      %64 = arith.addf %58, %63 : vector<8x8xf32>
      %cst_40 = arith.constant 0.353553385 : f32
      %65 = vector.broadcast %cst_40 : f32 to vector<8x8xf32>
      %66 = arith.mulf %64, %65 : vector<8x8xf32>
      %67 = arith.truncf %66 : vector<8x8xf32> to vector<8x8xbf16>
      %c0_41 = arith.constant 0 : index
      %c0_42 = arith.constant 0 : index
      %68 = vector.load %arg11[%c0_41, %c0_42] : memref<8x8xbf16, #tpu.memory_space<vmem>>, vector<8x8xbf16>
      tpu.vector_store %arg11[%c0_41, %c0_42], %67 {strides = array<i32>} : memref<8x8xbf16, #tpu.memory_space<vmem>>, vector<8x8xbf16>,
      %cst_43 = arith.constant -1.000000e+30 : f32
      %69 = vector.broadcast %cst_43 : f32 to vector<8x1xf32>
      %c0_44 = arith.constant 0 : index
      %c0_45 = arith.constant 0 : index
      %70 = vector.load %arg12[%c0_44, %c0_45] : memref<8x1xf32, #tpu.memory_space<vmem>>, vector<8x1xf32>
      tpu.vector_store %arg12[%c0_44, %c0_45], %69 {strides = array<i32>} : memref<8x1xf32, #tpu.memory_space<vmem>>, vector<8x1xf32>,
      %cst_46 = arith.constant 0.000000e+00 : f32
      %71 = vector.broadcast %cst_46 : f32 to vector<8x1xf32>
      %c0_47 = arith.constant 0 : index
      %c0_48 = arith.constant 0 : index
      %72 = vector.load %arg13[%c0_47, %c0_48] : memref<8x1xf32, #tpu.memory_space<vmem>>, vector<8x1xf32>
      tpu.vector_store %arg13[%c0_47, %c0_48], %71 {strides = array<i32>} : memref<8x1xf32, #tpu.memory_space<vmem>>, vector<8x1xf32>,
      %cst_49 = arith.constant 0.000000e+00 : f32
      %73 = vector.broadcast %cst_49 : f32 to vector<8x8xf32>
      %c0_50 = arith.constant 0 : index
      %c0_51 = arith.constant 0 : index
      %74 = vector.load %arg14[%c0_50, %c0_51] : memref<8x8xf32, #tpu.memory_space<vmem>>, vector<8x8xf32>
      tpu.vector_store %arg14[%c0_50, %c0_51], %73 {strides = array<i32>} : memref<8x8xf32, #tpu.memory_space<vmem>>, vector<8x8xf32>,
    } else {
    }
    %c0 = arith.constant 0 : index
    %c0_1 = arith.constant 0 : index
    %c0_2 = arith.constant 0 : index
    %c0_3 = arith.constant 0 : index
    %3 = vector.load %arg4[%c0, %c0_1, %c0_2, %c0_3] : memref<1x1x8x8xbf16, #tpu.memory_space<vmem>>, vector<1x1x8x8xbf16>
    %4 = vector.shape_cast %3 : vector<1x1x8x8xbf16> to vector<8x8xbf16>
    %5 = arith.extf %4 : vector<8x8xbf16> to vector<8x8xf32>
    %c0_4 = arith.constant 0 : index
    %c0_5 = arith.constant 0 : index
    %6 = vector.load %arg8[%c0_4, %c0_5] : memref<8x8xf32, #tpu.memory_space<vmem>>, vector<8x8xf32>
    %7 = arith.mulf %5, %6 : vector<8x8xf32>
    %8 = vector.extract_strided_slice %5 {offsets = [0, 4], sizes = [8, 4], strides = [1, 1]} : vector<8x8xf32> to vector<8x4xf32>
    %9 = vector.extract_strided_slice %5 {offsets = [0, 0], sizes = [8, 4], strides = [1, 1]} : vector<8x8xf32> to vector<8x4xf32>
    %10 = tpu.concatenate %8, %9 in 1 : vector<8x4xf32>, vector<8x4xf32> -> vector<8x8xf32>
    %c0_6 = arith.constant 0 : index
    %c0_7 = arith.constant 0 : index
    %11 = vector.load %arg9[%c0_6, %c0_7] : memref<8x8xf32, #tpu.memory_space<vmem>>, vector<8x8xf32>
    %12 = arith.mulf %10, %11 : vector<8x8xf32>
    %13 = arith.addf %7, %12 : vector<8x8xf32>
    %14 = arith.truncf %13 : vector<8x8xf32> to vector<8x8xbf16>
    %c0_8 = arith.constant 0 : index
    %c0_9 = arith.constant 0 : index
    %15 = vector.load %arg11[%c0_8, %c0_9] : memref<8x8xbf16, #tpu.memory_space<vmem>>, vector<8x8xbf16>
    %16 = tpu.transpose %14, [1, 0] : vector<8x8xbf16> -> vector<8x8xbf16>
    %cst = arith.constant dense<0.000000e+00> : vector<8x8xf32>
    %17 = tpu.matmul %15, %16, %cst {dimension_numbers = #tpu.dot_dimension_numbers<[1], [0], [0], [1], [0, 0, 1, 1], [], []>} : vector<8x8xbf16>, vector<8x8xbf16>, vector<8x8xf32> -> vector<8x8xf32>
    %18 = tpu.iota {dimensions = array<i32: 0>} : vector<8x8xi32>
    %19 = tpu.iota {dimensions = array<i32: 1>} : vector<8x8xi32>
    %c8_i32 = arith.constant 8 : i32
    %20 = arith.muli %arg2, %c8_i32 : i32
    %21 = vector.broadcast %20 : i32 to vector<8x8xi32>
    %22 = arith.addi %19, %21 : vector<8x8xi32>
    %23 = arith.cmpi sle, %22, %18 : vector<8x8xi32>
    %cst_10 = arith.constant -1.000000e+30 : f32
    %24 = vector.broadcast %cst_10 : f32 to vector<8x8xf32>
    %25 = arith.select %23, %17, %24 : vector<8x8xi1>, vector<8x8xf32>
    %c0_11 = arith.constant 0 : index
    %c0_12 = arith.constant 0 : index
    %26 = vector.load %arg12[%c0_11, %c0_12] : memref<8x1xf32, #tpu.memory_space<vmem>>, vector<8x1xf32>
    %cst_13 = arith.constant dense<0xFF800000> : vector<8xf32>
    %27 = vector.multi_reduction <maximumf>, %25, %cst_13 [1] : vector<8x8xf32> to vector<8xf32>
    %28 = vector.shape_cast %27 : vector<8xf32> to vector<8x1xf32>
    %29 = arith.maximumf %26, %28 : vector<8x1xf32>
    %30 = arith.subf %26, %29 : vector<8x1xf32>
    %31 = math.exp %30 : vector<8x1xf32>
    %32 = vector.broadcast %29 : vector<8x1xf32> to vector<8x8xf32>
    %33 = arith.subf %25, %32 : vector<8x8xf32>
    %34 = math.exp %33 : vector<8x8xf32>
    %c0_14 = arith.constant 0 : index
    %c0_15 = arith.constant 0 : index
    %35 = vector.load %arg13[%c0_14, %c0_15] : memref<8x1xf32, #tpu.memory_space<vmem>>, vector<8x1xf32>
    %36 = arith.mulf %31, %35 : vector<8x1xf32>
    %cst_16 = arith.constant dense<0.000000e+00> : vector<8xf32>
    %37 = vector.multi_reduction <add>, %34, %cst_16 [1] : vector<8x8xf32> to vector<8xf32>
    %38 = vector.shape_cast %37 : vector<8xf32> to vector<8x1xf32>
    %39 = arith.addf %36, %38 : vector<8x1xf32>
    %c0_17 = arith.constant 0 : index
    %c0_18 = arith.constant 0 : index
    %40 = vector.load %arg13[%c0_17, %c0_18] : memref<8x1xf32, #tpu.memory_space<vmem>>, vector<8x1xf32>
    tpu.vector_store %arg13[%c0_17, %c0_18], %39 {strides = array<i32>} : memref<8x1xf32, #tpu.memory_space<vmem>>, vector<8x1xf32>,
    %c0_19 = arith.constant 0 : index
    %c0_20 = arith.constant 0 : index
    %41 = vector.load %arg14[%c0_19, %c0_20] : memref<8x8xf32, #tpu.memory_space<vmem>>, vector<8x8xf32>
    %42 = vector.broadcast %31 : vector<8x1xf32> to vector<8x8xf32>
    %43 = arith.mulf %42, %41 : vector<8x8xf32>
    %44 = arith.truncf %34 : vector<8x8xf32> to vector<8x8xbf16>
    %c0_21 = arith.constant 0 : index
    %c0_22 = arith.constant 0 : index
    %c0_23 = arith.constant 0 : index
    %c0_24 = arith.constant 0 : index
    %45 = vector.load %arg5[%c0_21, %c0_22, %c0_23, %c0_24] : memref<1x1x8x8xbf16, #tpu.memory_space<vmem>>, vector<1x1x8x8xbf16>
    %46 = vector.shape_cast %45 : vector<1x1x8x8xbf16> to vector<8x8xbf16>
    %cst_25 = arith.constant dense<0.000000e+00> : vector<8x8xf32>
    %47 = tpu.matmul %44, %46, %cst_25 {dimension_numbers = #tpu.dot_dimension_numbers<[1], [0], [0], [1], [0, 0, 1, 1], [], []>} : vector<8x8xbf16>, vector<8x8xbf16>, vector<8x8xf32> -> vector<8x8xf32>
    %48 = arith.addf %43, %47 : vector<8x8xf32>
    %c0_26 = arith.constant 0 : index
    %c0_27 = arith.constant 0 : index
    %49 = vector.load %arg14[%c0_26, %c0_27] : memref<8x8xf32, #tpu.memory_space<vmem>>, vector<8x8xf32>
    tpu.vector_store %arg14[%c0_26, %c0_27], %48 {strides = array<i32>} : memref<8x8xf32, #tpu.memory_space<vmem>>, vector<8x8xf32>,
    %c0_28 = arith.constant 0 : index
    %c0_29 = arith.constant 0 : index
    %50 = vector.load %arg12[%c0_28, %c0_29] : memref<8x1xf32, #tpu.memory_space<vmem>>, vector<8x1xf32>
    tpu.vector_store %arg12[%c0_28, %c0_29], %29 {strides = array<i32>} : memref<8x1xf32, #tpu.memory_space<vmem>>, vector<8x1xf32>,
    %c0_i32_30 = arith.constant 0 : i32
    %51 = arith.cmpi eq, %arg2, %c0_i32_30 : i32
    %52 = arith.extui %51 : i1 to i32
    %c0_i32_31 = arith.constant 0 : i32
    %53 = arith.cmpi ne, %52, %c0_i32_31 : i32
    scf.if %53 {
      %c0_32 = arith.constant 0 : index
      %c0_33 = arith.constant 0 : index
      %54 = vector.load %arg14[%c0_32, %c0_33] : memref<8x8xf32, #tpu.memory_space<vmem>>, vector<8x8xf32>
      %c0_34 = arith.constant 0 : index
      %c0_35 = arith.constant 0 : index
      %55 = vector.load %arg13[%c0_34, %c0_35] : memref<8x1xf32, #tpu.memory_space<vmem>>, vector<8x1xf32>
      %56 = tpu.reciprocal %55 {approx = true} : vector<8x1xf32> -> vector<8x1xf32>
      %57 = vector.broadcast %56 : vector<8x1xf32> to vector<8x8xf32>
      %58 = arith.mulf %54, %57 : vector<8x8xf32>
      %59 = arith.truncf %58 : vector<8x8xf32> to vector<8x8xbf16>
      %c0_36 = arith.constant 0 : index
      %c0_37 = arith.constant 0 : index
      %c0_38 = arith.constant 0 : index
      %c0_39 = arith.constant 0 : index
      %60 = vector.load %arg10[%c0_36, %c0_37, %c0_38, %c0_39] : memref<1x1x8x8xbf16, #tpu.memory_space<vmem>>, vector<1x1x8x8xbf16>
      %61 = vector.shape_cast %60 : vector<1x1x8x8xbf16> to vector<8x8xbf16>
      %62 = vector.shape_cast %59 : vector<8x8xbf16> to vector<1x1x8x8xbf16>
      tpu.vector_store %arg10[%c0_36, %c0_37, %c0_38, %c0_39], %62 {strides = array<i32>} : memref<1x1x8x8xbf16, #tpu.memory_space<vmem>>, vector<1x1x8x8xbf16>,
    } else {
    }
    return
  }
  func.func @transform_0(%arg0: i32, %arg1: i32, %arg2: i32) -> (i32, i32, i32, i32) {
    %c0_i32 = arith.constant 0 : i32
    %c0_i32_0 = arith.constant 0 : i32
    %c0_i32_1 = arith.constant 0 : i32
    return %arg0, %arg1, %c0_i32, %c0_i32_0 : i32, i32, i32, i32
  }
  func.func @transform_1(%arg0: i32, %arg1: i32, %arg2: i32) -> (i32, i32, i32, i32) {
    %c0_i32 = arith.constant 0 : i32
    %c0_i32_0 = arith.constant 0 : i32
    return %arg0, %arg1, %arg2, %c0_i32 : i32, i32, i32, i32
  }
  func.func @transform_2(%arg0: i32, %arg1: i32, %arg2: i32) -> (i32, i32, i32, i32) {
    %c0_i32 = arith.constant 0 : i32
    %c0_i32_0 = arith.constant 0 : i32
    return %arg0, %arg1, %arg2, %c0_i32 : i32, i32, i32, i32
  }
  func.func @transform_3(%arg0: i32, %arg1: i32, %arg2: i32) -> (i32, i32) {
    %c0_i32 = arith.constant 0 : i32
    %c0_i32_0 = arith.constant 0 : i32
    %c0_i32_1 = arith.constant 0 : i32
    return %c0_i32, %c0_i32_0 : i32, i32
  }
  func.func @transform_4(%arg0: i32, %arg1: i32, %arg2: i32) -> (i32, i32) {
    %c0_i32 = arith.constant 0 : i32
    %c0_i32_0 = arith.constant 0 : i32
    %c0_i32_1 = arith.constant 0 : i32
    return %c0_i32, %c0_i32_0 : i32, i32
  }
  func.func @transform_5(%arg0: i32, %arg1: i32, %arg2: i32) -> (i32, i32) {
    %c0_i32 = arith.constant 0 : i32
    %c0_i32_0 = arith.constant 0 : i32
    return %arg2, %c0_i32 : i32, i32
  }
  func.func @transform_6(%arg0: i32, %arg1: i32, %arg2: i32) -> (i32, i32) {
    %c0_i32 = arith.constant 0 : i32
    %c0_i32_0 = arith.constant 0 : i32
    return %arg2, %c0_i32 : i32, i32
  }
  func.func @transform_7(%arg0: i32, %arg1: i32, %arg2: i32) -> (i32, i32, i32, i32) {
    %c0_i32 = arith.constant 0 : i32
    %c0_i32_0 = arith.constant 0 : i32
    %c0_i32_1 = arith.constant 0 : i32
    return %arg0, %arg1, %c0_i32, %c0_i32_0 : i32, i32, i32, i32
  }
}

module attributes {stable_mosaic.version = 11 : i64} {
  func.func @kernel(%arg0: i32, %arg1: i32, %arg2: i32, %arg3: memref<16x32xbf16, #tpu.memory_space<vmem>>, %arg4: memref<32x64xbf16, #tpu.memory_space<vmem>>, %arg5: memref<16x64xbf16, #tpu.memory_space<vmem>>, %arg6: memref<16x64xf32, #tpu.memory_space<vmem>>) attributes {dimension_semantics = [#tpu.dimension_semantics<parallel>, #tpu.dimension_semantics<parallel>, #tpu.dimension_semantics<arbitrary>], iteration_bounds = array<i64: 1, 1, 1>, scalar_prefetch = 0 : i64, scratch_operands = 1 : i64, tpu.core_type = #tpu.core_type<tc>, window_params = [{transform_indices = @transform_0, window_bounds = array<i64: 16, 32>}, {transform_indices = @transform_1, window_bounds = array<i64: 32, 64>}, {transform_indices = @transform_2, window_bounds = array<i64: 16, 64>}]} {
    %c0_i32 = arith.constant 0 : i32
    %0 = arith.cmpi eq, %arg2, %c0_i32 : i32
    %1 = arith.extui %0 : i1 to i32
    %c0_i32_0 = arith.constant 0 : i32
    %2 = arith.cmpi ne, %1, %c0_i32_0 : i32
    scf.if %2 {
      %cst_10 = arith.constant 0.000000e+00 : f32
      %12 = vector.broadcast %cst_10 : f32 to vector<16x64xf32>
      %c0_11 = arith.constant 0 : index
      %c0_12 = arith.constant 0 : index
      %13 = vector.load %arg6[%c0_11, %c0_12] : memref<16x64xf32, #tpu.memory_space<vmem>>, vector<16x64xf32>
      tpu.vector_store %arg6[%c0_11, %c0_12], %12 {strides = array<i32>} : memref<16x64xf32, #tpu.memory_space<vmem>>, vector<16x64xf32>,
    } else {
    }
    %c0 = arith.constant 0 : index
    %c0_1 = arith.constant 0 : index
    %3 = vector.load %arg3[%c0, %c0_1] : memref<16x32xbf16, #tpu.memory_space<vmem>>, vector<16x32xbf16>
    %c0_2 = arith.constant 0 : index
    %c0_3 = arith.constant 0 : index
    %4 = vector.load %arg6[%c0_2, %c0_3] : memref<16x64xf32, #tpu.memory_space<vmem>>, vector<16x64xf32>
    %c0_4 = arith.constant 0 : index
    %c0_5 = arith.constant 0 : index
    %5 = vector.load %arg4[%c0_4, %c0_5] : memref<32x64xbf16, #tpu.memory_space<vmem>>, vector<32x64xbf16>
    %cst = arith.constant dense<0.000000e+00> : vector<16x64xf32>
    %6 = tpu.matmul %3, %5, %cst {dimension_numbers = #tpu.dot_dimension_numbers<[1], [0], [0], [1], [0, 0, 1, 1], [], []>} : vector<16x32xbf16>, vector<32x64xbf16>, vector<16x64xf32> -> vector<16x64xf32>
    %7 = arith.addf %4, %6 : vector<16x64xf32>
    %c0_6 = arith.constant 0 : index
    %c0_7 = arith.constant 0 : index
    %8 = vector.load %arg6[%c0_6, %c0_7] : memref<16x64xf32, #tpu.memory_space<vmem>>, vector<16x64xf32>
    tpu.vector_store %arg6[%c0_6, %c0_7], %7 {strides = array<i32>} : memref<16x64xf32, #tpu.memory_space<vmem>>, vector<16x64xf32>,
    %c0_i32_8 = arith.constant 0 : i32
    %9 = arith.cmpi eq, %arg2, %c0_i32_8 : i32
    %10 = arith.extui %9 : i1 to i32
    %c0_i32_9 = arith.constant 0 : i32
    %11 = arith.cmpi ne, %10, %c0_i32_9 : i32
    scf.if %11 {
      %c0_10 = arith.constant 0 : index
      %c0_11 = arith.constant 0 : index
      %12 = vector.load %arg6[%c0_10, %c0_11] : memref<16x64xf32, #tpu.memory_space<vmem>>, vector<16x64xf32>
      %13 = arith.truncf %12 : vector<16x64xf32> to vector<16x64xbf16>
      %c0_12 = arith.constant 0 : index
      %c0_13 = arith.constant 0 : index
      %14 = vector.load %arg5[%c0_12, %c0_13] : memref<16x64xbf16, #tpu.memory_space<vmem>>, vector<16x64xbf16>
      tpu.vector_store %arg5[%c0_12, %c0_13], %13 {strides = array<i32>} : memref<16x64xbf16, #tpu.memory_space<vmem>>, vector<16x64xbf16>,
    } else {
    }
    return
  }
  func.func @transform_0(%arg0: i32, %arg1: i32, %arg2: i32) -> (i32, i32) {
    %c0_i32 = arith.constant 0 : i32
    return %arg0, %arg2 : i32, i32
  }
  func.func @transform_1(%arg0: i32, %arg1: i32, %arg2: i32) -> (i32, i32) {
    %c0_i32 = arith.constant 0 : i32
    return %arg2, %arg1 : i32, i32
  }
  func.func @transform_2(%arg0: i32, %arg1: i32, %arg2: i32) -> (i32, i32) {
    %c0_i32 = arith.constant 0 : i32
    return %arg0, %arg1 : i32, i32
  }
}

module attributes {stable_mosaic.version = 11 : i64} {
  func.func @kernel(%arg0: i32, %arg1: i32, %arg2: i32, %arg3: memref<16x32xbf16, #tpu.memory_space<vmem>>, %arg4: memref<32x32xbf16, #tpu.memory_space<vmem>>, %arg5: memref<16x32xf32, #tpu.memory_space<vmem>>, %arg6: memref<16x32xf32, #tpu.memory_space<vmem>>, %arg7: memref<16x32xf32, #tpu.memory_space<vmem>>) attributes {dimension_semantics = [#tpu.dimension_semantics<parallel>, #tpu.dimension_semantics<parallel>, #tpu.dimension_semantics<arbitrary>], iteration_bounds = array<i64: 1, 1, 1>, scalar_prefetch = 0 : i64, scratch_operands = 1 : i64, tpu.core_type = #tpu.core_type<tc>, window_params = [{transform_indices = @transform_0, window_bounds = array<i64: 16, 32>}, {transform_indices = @transform_1, window_bounds = array<i64: 32, 32>}, {transform_indices = @transform_2, window_bounds = array<i64: 16, 32>}, {transform_indices = @transform_3, window_bounds = array<i64: 16, 32>}]} {
    %c0_i32 = arith.constant 0 : i32
    %0 = arith.cmpi eq, %arg2, %c0_i32 : i32
    %1 = arith.extui %0 : i1 to i32
    %c0_i32_0 = arith.constant 0 : i32
    %2 = arith.cmpi ne, %1, %c0_i32_0 : i32
    scf.if %2 {
      %cst_10 = arith.constant 0.000000e+00 : f32
      %12 = vector.broadcast %cst_10 : f32 to vector<16x32xf32>
      %c0_11 = arith.constant 0 : index
      %c0_12 = arith.constant 0 : index
      %13 = vector.load %arg7[%c0_11, %c0_12] : memref<16x32xf32, #tpu.memory_space<vmem>>, vector<16x32xf32>
      tpu.vector_store %arg7[%c0_11, %c0_12], %12 {strides = array<i32>} : memref<16x32xf32, #tpu.memory_space<vmem>>, vector<16x32xf32>,
    } else {
    }
    %c0 = arith.constant 0 : index
    %c0_1 = arith.constant 0 : index
    %3 = vector.load %arg3[%c0, %c0_1] : memref<16x32xbf16, #tpu.memory_space<vmem>>, vector<16x32xbf16>
    %c0_2 = arith.constant 0 : index
    %c0_3 = arith.constant 0 : index
    %4 = vector.load %arg7[%c0_2, %c0_3] : memref<16x32xf32, #tpu.memory_space<vmem>>, vector<16x32xf32>
    %c0_4 = arith.constant 0 : index
    %c0_5 = arith.constant 0 : index
    %5 = vector.load %arg4[%c0_4, %c0_5] : memref<32x32xbf16, #tpu.memory_space<vmem>>, vector<32x32xbf16>
    %cst = arith.constant dense<0.000000e+00> : vector<16x32xf32>
    %6 = tpu.matmul %3, %5, %cst {dimension_numbers = #tpu.dot_dimension_numbers<[1], [0], [0], [1], [0, 0, 1, 1], [], []>} : vector<16x32xbf16>, vector<32x32xbf16>, vector<16x32xf32> -> vector<16x32xf32>
    %7 = arith.addf %4, %6 : vector<16x32xf32>
    %c0_6 = arith.constant 0 : index
    %c0_7 = arith.constant 0 : index
    %8 = vector.load %arg7[%c0_6, %c0_7] : memref<16x32xf32, #tpu.memory_space<vmem>>, vector<16x32xf32>
    tpu.vector_store %arg7[%c0_6, %c0_7], %7 {strides = array<i32>} : memref<16x32xf32, #tpu.memory_space<vmem>>, vector<16x32xf32>,
    %c0_i32_8 = arith.constant 0 : i32
    %9 = arith.cmpi eq, %arg2, %c0_i32_8 : i32
    %10 = arith.extui %9 : i1 to i32
    %c0_i32_9 = arith.constant 0 : i32
    %11 = arith.cmpi ne, %10, %c0_i32_9 : i32
    scf.if %11 {
      %c0_10 = arith.constant 0 : index
      %c0_11 = arith.constant 0 : index
      %12 = vector.load %arg7[%c0_10, %c0_11] : memref<16x32xf32, #tpu.memory_space<vmem>>, vector<16x32xf32>
      %c0_12 = arith.constant 0 : index
      %c0_13 = arith.constant 0 : index
      %13 = vector.load %arg5[%c0_12, %c0_13] : memref<16x32xf32, #tpu.memory_space<vmem>>, vector<16x32xf32>
      %14 = arith.addf %12, %13 : vector<16x32xf32>
      %c0_14 = arith.constant 0 : index
      %c0_15 = arith.constant 0 : index
      %15 = vector.load %arg6[%c0_14, %c0_15] : memref<16x32xf32, #tpu.memory_space<vmem>>, vector<16x32xf32>
      tpu.vector_store %arg6[%c0_14, %c0_15], %14 {strides = array<i32>} : memref<16x32xf32, #tpu.memory_space<vmem>>, vector<16x32xf32>,
    } else {
    }
    return
  }
  func.func @transform_0(%arg0: i32, %arg1: i32, %arg2: i32) -> (i32, i32) {
    %c0_i32 = arith.constant 0 : i32
    return %arg0, %arg2 : i32, i32
  }
  func.func @transform_1(%arg0: i32, %arg1: i32, %arg2: i32) -> (i32, i32) {
    %c0_i32 = arith.constant 0 : i32
    return %arg2, %arg1 : i32, i32
  }
  func.func @transform_2(%arg0: i32, %arg1: i32, %arg2: i32) -> (i32, i32) {
    %c0_i32 = arith.constant 0 : i32
    return %arg0, %arg1 : i32, i32
  }
  func.func @transform_3(%arg0: i32, %arg1: i32, %arg2: i32) -> (i32, i32) {
    %c0_i32 = arith.constant 0 : i32
    return %arg0, %arg1 : i32, i32
  }
}

module attributes {stable_mosaic.version = 11 : i64} {
  func.func @kernel(%arg0: i32, %arg1: i32, %arg2: i32, %arg3: memref<16x64xbf16, #tpu.memory_space<vmem>>, %arg4: memref<16x64xbf16, #tpu.memory_space<vmem>>, %arg5: memref<64x32xbf16, #tpu.memory_space<vmem>>, %arg6: memref<16x32xf32, #tpu.memory_space<vmem>>, %arg7: memref<16x32xf32, #tpu.memory_space<vmem>>, %arg8: memref<16x32xf32, #tpu.memory_space<vmem>>) attributes {dimension_semantics = [#tpu.dimension_semantics<parallel>, #tpu.dimension_semantics<parallel>, #tpu.dimension_semantics<arbitrary>], iteration_bounds = array<i64: 1, 1, 1>, scalar_prefetch = 0 : i64, scratch_operands = 1 : i64, tpu.core_type = #tpu.core_type<tc>, window_params = [{transform_indices = @transform_0, window_bounds = array<i64: 16, 64>}, {transform_indices = @transform_1, window_bounds = array<i64: 16, 64>}, {transform_indices = @transform_2, window_bounds = array<i64: 64, 32>}, {transform_indices = @transform_3, window_bounds = array<i64: 16, 32>}, {transform_indices = @transform_4, window_bounds = array<i64: 16, 32>}]} {
    %c0_i32 = arith.constant 0 : i32
    %0 = arith.cmpi eq, %arg2, %c0_i32 : i32
    %1 = arith.extui %0 : i1 to i32
    %c0_i32_0 = arith.constant 0 : i32
    %2 = arith.cmpi ne, %1, %c0_i32_0 : i32
    scf.if %2 {
      %cst_12 = arith.constant 0.000000e+00 : f32
      %17 = vector.broadcast %cst_12 : f32 to vector<16x32xf32>
      %c0_13 = arith.constant 0 : index
      %c0_14 = arith.constant 0 : index
      %18 = vector.load %arg8[%c0_13, %c0_14] : memref<16x32xf32, #tpu.memory_space<vmem>>, vector<16x32xf32>
      tpu.vector_store %arg8[%c0_13, %c0_14], %17 {strides = array<i32>} : memref<16x32xf32, #tpu.memory_space<vmem>>, vector<16x32xf32>,
    } else {
    }
    %c0 = arith.constant 0 : index
    %c0_1 = arith.constant 0 : index
    %3 = vector.load %arg3[%c0, %c0_1] : memref<16x64xbf16, #tpu.memory_space<vmem>>, vector<16x64xbf16>
    %4 = arith.extf %3 : vector<16x64xbf16> to vector<16x64xf32>
    %c0_2 = arith.constant 0 : index
    %c0_3 = arith.constant 0 : index
    %5 = vector.load %arg4[%c0_2, %c0_3] : memref<16x64xbf16, #tpu.memory_space<vmem>>, vector<16x64xbf16>
    %6 = arith.extf %5 : vector<16x64xbf16> to vector<16x64xf32>
    %7 = arith.mulf %4, %6 : vector<16x64xf32>
    %8 = arith.truncf %7 : vector<16x64xf32> to vector<16x64xbf16>
    %c0_4 = arith.constant 0 : index
    %c0_5 = arith.constant 0 : index
    %9 = vector.load %arg8[%c0_4, %c0_5] : memref<16x32xf32, #tpu.memory_space<vmem>>, vector<16x32xf32>
    %c0_6 = arith.constant 0 : index
    %c0_7 = arith.constant 0 : index
    %10 = vector.load %arg5[%c0_6, %c0_7] : memref<64x32xbf16, #tpu.memory_space<vmem>>, vector<64x32xbf16>
    %cst = arith.constant dense<0.000000e+00> : vector<16x32xf32>
    %11 = tpu.matmul %8, %10, %cst {dimension_numbers = #tpu.dot_dimension_numbers<[1], [0], [0], [1], [0, 0, 1, 1], [], []>} : vector<16x64xbf16>, vector<64x32xbf16>, vector<16x32xf32> -> vector<16x32xf32>
    %12 = arith.addf %9, %11 : vector<16x32xf32>
    %c0_8 = arith.constant 0 : index
    %c0_9 = arith.constant 0 : index
    %13 = vector.load %arg8[%c0_8, %c0_9] : memref<16x32xf32, #tpu.memory_space<vmem>>, vector<16x32xf32>
    tpu.vector_store %arg8[%c0_8, %c0_9], %12 {strides = array<i32>} : memref<16x32xf32, #tpu.memory_space<vmem>>, vector<16x32xf32>,
    %c0_i32_10 = arith.constant 0 : i32
    %14 = arith.cmpi eq, %arg2, %c0_i32_10 : i32
    %15 = arith.extui %14 : i1 to i32
    %c0_i32_11 = arith.constant 0 : i32
    %16 = arith.cmpi ne, %15, %c0_i32_11 : i32
    scf.if %16 {
      %c0_12 = arith.constant 0 : index
      %c0_13 = arith.constant 0 : index
      %17 = vector.load %arg8[%c0_12, %c0_13] : memref<16x32xf32, #tpu.memory_space<vmem>>, vector<16x32xf32>
      %c0_14 = arith.constant 0 : index
      %c0_15 = arith.constant 0 : index
      %18 = vector.load %arg6[%c0_14, %c0_15] : memref<16x32xf32, #tpu.memory_space<vmem>>, vector<16x32xf32>
      %19 = arith.addf %17, %18 : vector<16x32xf32>
      %c0_16 = arith.constant 0 : index
      %c0_17 = arith.constant 0 : index
      %20 = vector.load %arg7[%c0_16, %c0_17] : memref<16x32xf32, #tpu.memory_space<vmem>>, vector<16x32xf32>
      tpu.vector_store %arg7[%c0_16, %c0_17], %19 {strides = array<i32>} : memref<16x32xf32, #tpu.memory_space<vmem>>, vector<16x32xf32>,
    } else {
    }
    return
  }
  func.func @transform_0(%arg0: i32, %arg1: i32, %arg2: i32) -> (i32, i32) {
    %c0_i32 = arith.constant 0 : i32
    return %arg0, %arg2 : i32, i32
  }
  func.func @transform_1(%arg0: i32, %arg1: i32, %arg2: i32) -> (i32, i32) {
    %c0_i32 = arith.constant 0 : i32
    return %arg0, %arg2 : i32, i32
  }
  func.func @transform_2(%arg0: i32, %arg1: i32, %arg2: i32) -> (i32, i32) {
    %c0_i32 = arith.constant 0 : i32
    return %arg2, %arg1 : i32, i32
  }
  func.func @transform_3(%arg0: i32, %arg1: i32, %arg2: i32) -> (i32, i32) {
    %c0_i32 = arith.constant 0 : i32
    return %arg0, %arg1 : i32, i32
  }
  func.func @transform_4(%arg0: i32, %arg1: i32, %arg2: i32) -> (i32, i32) {
    %c0_i32 = arith.constant 0 : i32
    return %arg0, %arg1 : i32, i32
  }
}

module attributes {stable_mosaic.version = 11 : i64} {
  func.func @kernel(%arg0: i32, %arg1: i32, %arg2: i32, %arg3: memref<16x96xbf16, #tpu.memory_space<vmem>>, %arg4: memref<96x128xbf16, #tpu.memory_space<vmem>>, %arg5: memref<16x128xf32, #tpu.memory_space<vmem>>, %arg6: memref<16x128xf32, #tpu.memory_space<vmem>>) attributes {dimension_semantics = [#tpu.dimension_semantics<parallel>, #tpu.dimension_semantics<parallel>, #tpu.dimension_semantics<arbitrary>], iteration_bounds = array<i64: 1, 1, 1>, scalar_prefetch = 0 : i64, scratch_operands = 1 : i64, tpu.core_type = #tpu.core_type<tc>, window_params = [{transform_indices = @transform_0, window_bounds = array<i64: 16, 96>}, {transform_indices = @transform_1, window_bounds = array<i64: 96, 128>}, {transform_indices = @transform_2, window_bounds = array<i64: 16, 128>}]} {
    %c0_i32 = arith.constant 0 : i32
    %0 = arith.cmpi eq, %arg2, %c0_i32 : i32
    %1 = arith.extui %0 : i1 to i32
    %c0_i32_0 = arith.constant 0 : i32
    %2 = arith.cmpi ne, %1, %c0_i32_0 : i32
    scf.if %2 {
      %cst_10 = arith.constant 0.000000e+00 : f32
      %12 = vector.broadcast %cst_10 : f32 to vector<16x128xf32>
      %c0_11 = arith.constant 0 : index
      %c0_12 = arith.constant 0 : index
      %13 = vector.load %arg6[%c0_11, %c0_12] : memref<16x128xf32, #tpu.memory_space<vmem>>, vector<16x128xf32>
      tpu.vector_store %arg6[%c0_11, %c0_12], %12 {strides = array<i32>} : memref<16x128xf32, #tpu.memory_space<vmem>>, vector<16x128xf32>,
    } else {
    }
    %c0 = arith.constant 0 : index
    %c0_1 = arith.constant 0 : index
    %3 = vector.load %arg3[%c0, %c0_1] : memref<16x96xbf16, #tpu.memory_space<vmem>>, vector<16x96xbf16>
    %c0_2 = arith.constant 0 : index
    %c0_3 = arith.constant 0 : index
    %4 = vector.load %arg6[%c0_2, %c0_3] : memref<16x128xf32, #tpu.memory_space<vmem>>, vector<16x128xf32>
    %c0_4 = arith.constant 0 : index
    %c0_5 = arith.constant 0 : index
    %5 = vector.load %arg4[%c0_4, %c0_5] : memref<96x128xbf16, #tpu.memory_space<vmem>>, vector<96x128xbf16>
    %cst = arith.constant dense<0.000000e+00> : vector<16x128xf32>
    %6 = tpu.matmul %3, %5, %cst {dimension_numbers = #tpu.dot_dimension_numbers<[1], [0], [0], [1], [0, 0, 1, 1], [], []>} : vector<16x96xbf16>, vector<96x128xbf16>, vector<16x128xf32> -> vector<16x128xf32>
    %7 = arith.addf %4, %6 : vector<16x128xf32>
    %c0_6 = arith.constant 0 : index
    %c0_7 = arith.constant 0 : index
    %8 = vector.load %arg6[%c0_6, %c0_7] : memref<16x128xf32, #tpu.memory_space<vmem>>, vector<16x128xf32>
    tpu.vector_store %arg6[%c0_6, %c0_7], %7 {strides = array<i32>} : memref<16x128xf32, #tpu.memory_space<vmem>>, vector<16x128xf32>,
    %c0_i32_8 = arith.constant 0 : i32
    %9 = arith.cmpi eq, %arg2, %c0_i32_8 : i32
    %10 = arith.extui %9 : i1 to i32
    %c0_i32_9 = arith.constant 0 : i32
    %11 = arith.cmpi ne, %10, %c0_i32_9 : i32
    scf.if %11 {
      %c0_10 = arith.constant 0 : index
      %c0_11 = arith.constant 0 : index
      %12 = vector.load %arg6[%c0_10, %c0_11] : memref<16x128xf32, #tpu.memory_space<vmem>>, vector<16x128xf32>
      %cst_12 = arith.constant 0.333333343 : f32
      %13 = vector.broadcast %cst_12 : f32 to vector<16x128xf32>
      %14 = arith.mulf %12, %13 : vector<16x128xf32>
      %c0_13 = arith.constant 0 : index
      %c0_14 = arith.constant 0 : index
      %15 = vector.load %arg5[%c0_13, %c0_14] : memref<16x128xf32, #tpu.memory_space<vmem>>, vector<16x128xf32>
      tpu.vector_store %arg5[%c0_13, %c0_14], %14 {strides = array<i32>} : memref<16x128xf32, #tpu.memory_space<vmem>>, vector<16x128xf32>,
    } else {
    }
    return
  }
  func.func @transform_0(%arg0: i32, %arg1: i32, %arg2: i32) -> (i32, i32) {
    %c0_i32 = arith.constant 0 : i32
    return %arg0, %arg2 : i32, i32
  }
  func.func @transform_1(%arg0: i32, %arg1: i32, %arg2: i32) -> (i32, i32) {
    %c0_i32 = arith.constant 0 : i32
    return %arg2, %arg1 : i32, i32
  }
  func.func @transform_2(%arg0: i32, %arg1: i32, %arg2: i32) -> (i32, i32) {
    %c0_i32 = arith.constant 0 : i32
    return %arg0, %arg1 : i32, i32
  }
}

</mosaic_0001>

<bundles_post_ra>
// kernel: treenet_forward.68
= control target key start
LH: loop header
LB: loop body
LE: loop exit
PB: predicated region body
PF: predicated region fallthrough
CT: control target
= control target key end

     0   :  { %vm15_vm0 = vcmask 261120   ;;  %vm48_vm1 = vcmask 257024   ;;  %s94_s0 = inlined_call_operand.vmem [shape: f32[16,32], index: 0, kind: input, shape index: {}]   ;;  %s95_s1 = inlined_call_operand.vmem [shape: f32[1,32], index: 1, kind: input, shape index: {}]   ;;  %s96_s2 = inlined_call_operand.vmem [shape: bf16[16,32], index: 2, kind: output, shape index: {}]  }
   0x1   :  { %v11_v0 = vld [vmem:[%s94_s0] sm:$0xff]  ;;  %v12_v1 = vld [vmem:[%s94_s0 + $0x8] sm:$0xff] }
   0x2   :  { %v13_v2 = vmul.f32 %v11_v0, %v11_v0  ;;  %v14_v3 = vmul.f32 %v12_v1, %v12_v1  ;;  %v55_v13 = vld [vmem:[%s95_s1] ss:$0 sm:$0xff] }
   0x4   :  { %v16_v4 = vsel %vm15_vm0, %v13_v2, 0.0  ;;  %v19_v5 = vsel %vm15_vm0, %v14_v3, 0.0 }
   0x5   :  { %17 = vadd.xlane.f32.xlu0 %v16_v4 }
   0x9   :  { %20 = vadd.xlane.f32.xlu0 %v19_v5 }
  0x92   :  { %v18_v6 = vpop.xlane.xlu0 %17 }
  0x93   :  { %v23_v7 = vmul.f32 0.03125, %v18_v6 }
  0x95   :  { %v25_v8 = vadd.f32 1e-06, %v23_v7 }
  0x96   :  { %v21_v9 = vpop.xlane.xlu0 %20 }
  0x97   :  { %60 = vrsqrt.f32 %v25_v8  ;;  %v24_v10 = vmul.f32 0.03125, %v21_v9 }
  0x99   :  { %v26_v11 = vadd.f32 1e-06, %v24_v10 }
  0x9b   :  { %62 = vrsqrt.f32 %v26_v11 }
  0xa1   :  { %v61_v12 = vpop.eup %60 }
  0xa2   :  { %v29_v14 = vmul.f32 %v61_v12, %v11_v0 }
  0xa4   :  { %v38_v15 = vmul.f32 %v55_v13, %v29_v14 }
  0xa5   :  { %v63_v16 = vpop.eup %62 }
  0xa6   :  { %v58_v17 = vpack.c.bf16 %v38_v15, %v38_v15  ;;  %v30_v18 = vmul.f32 %v63_v16, %v12_v1 }
  0xa8   :  { %49 = vst.msk [vmem:[%s96_s2] sm:$0xf] %vm48_vm1, %v58_v17  ;;  %v39_v19 = vmul.f32 %v55_v13, %v30_v18 }
  0xaa   :  { %v59_v20 = vpack.c.bf16 %v39_v19, %v39_v19 }
  0xac   :  { %50 = vst.msk [vmem:[%s96_s2 + $0x4] sm:$0xf] %vm48_vm1, %v59_v20 }

// kernel: treenet_forward.69
= control target key start
LH: loop header
LB: loop body
LE: loop exit
PB: predicated region body
PF: predicated region fallthrough
CT: control target
= control target key end

     0   :  { %vm16_vm0 = vcmask 785408   ;;  %v138_v0 = vmov 0.0   ;;  %vm139_vm1 = vmmov 0   ;;  %vm44_vm2 = vcmask 261120   ;;  %s174_s1 = inlined_call_operand.vmem [shape: bf16[32,96], index: 1, kind: input, shape index: {}]   ;;  %s175_s0 = inlined_call_operand.vmem [shape: bf16[16,32], index: 0, kind: input, shape index: {}]   ;;  %s176_s2 = inlined_call_operand.vmem [shape: bf16[16,96], index: 2, kind: output, shape index: {}]  }
   0x1   :  { %125 = vmatprep.subr.bf16.mxu0 %v138_v0  ;;  %v135_v1 = vld [vmem:[%s174_s1] sm:$0xff]   ;;  %129 = vmatprep.mubr.msk.bf16.mxu0 %vm139_vm1, %v138_v0  ;;  %17 = vst.msk [vmem:[#allocation2] sm:$0xff] %vm16_vm0, %v138_v0  ;;  %18 = vst.msk [vmem:[#allocation2 + $0x8] sm:$0xff] %vm16_vm0, %v138_v0  ;;  %v136_v2 = vld [vmem:[%s174_s1 + $0x8] sm:$0xff]   ;;  %vm107_vm3 = vcmask 781312  }
   0x2   :  { %126 = vmatpush3.bf16.msra.mxu0 %v135_v1  ;;  %v137_v3 = vld [vmem:[%s175_s0] sm:$0xff]  }
   0x3   :  { %127 = vmatprep.subr.bf16.mxu0 %v138_v0 }
   0x6   :  { %128 = vmatpush3.bf16.msra.mxu0 %v136_v2 }
   0x8   :  { %v21_v4 = vld [vmem:[#allocation2] sm:$0xff]  ;;  %v22_v6 = vld [vmem:[#allocation2 + $0x8] sm:$0xff] }
   0x9   :  { %130 = vmatmul.mubr.msk.bf16.vlgmr.msra.gmra.mrb[0].mxu0 %vm44_vm2, %v137_v3 }
  0xdc   :  { %v82_v5 = vpop.f32.mrb[0].mxu0 }
  0xdd   :  { %v89_v7 = vadd.f32 %v82_v5, %v21_v4  ;;  %v131_v8 = vpop.f32.mrb[1].mxu0 }
  0xde   :  { %v85_v9 = vpop.f32.mrb[2].mxu0 }
  0xdf   :  { %92 = vst.msk [vmem:[#allocation2] sm:$0xff] %vm16_vm0, %v89_v7  ;;  %v90_v10 = vadd.f32 %v85_v9, %v22_v6  ;;  %v132_v11 = vpop.f32.mrb[3].mxu0 }
  0xe1   :  { %93 = vst.msk [vmem:[#allocation2 + $0x8] sm:$0xff] %vm16_vm0, %v90_v10 }
  0xe6   :  { %v97_v12 = vld [vmem:[#allocation2] sm:$0xff] }
  0xe7   :  { %v120_v13 = vpack.c.bf16 %v97_v12, %v97_v12 }
  0xe8   :  { %v98_v14 = vld [vmem:[#allocation2 + $0x8] sm:$0xff] }
  0xe9   :  { %108 = vst.msk [vmem:[%s176_s2] sm:$0xf] %vm107_vm3, %v120_v13  ;;  %v121_v15 = vpack.c.bf16 %v98_v14, %v98_v14 }
  0xeb   :  { %109 = vst.msk [vmem:[%s176_s2 + $0x4] sm:$0xf] %vm107_vm3, %v121_v15 }

// kernel: treenet_forward.73
= control target key start
LH: loop header
LB: loop body
LE: loop exit
PB: predicated region body
PF: predicated region fallthrough
CT: control target
= control target key end

     0   :  { %vm16_vm0 = vcmask 523264   ;;  %v162_v0 = vmov 0.0   ;;  %vm163_vm1 = vmmov 0   ;;  %vm44_vm2 = vcmask 261120   ;;  %s198_s1 = inlined_call_operand.vmem [shape: bf16[32,64], index: 1, kind: input, shape index: {}]   ;;  %s199_s0 = inlined_call_operand.vmem [shape: bf16[16,32], index: 0, kind: input, shape index: {}]   ;;  %s200_s2 = inlined_call_operand.vmem [shape: bf16[16,64], index: 2, kind: output, shape index: {}]  }
   0x1   :  { %141 = vmatprep.subr.bf16.mxu0 %v162_v0  ;;  %v151_v1 = vld [vmem:[%s198_s1] sm:$0xff]   ;;  %145 = vmatprep.mubr.msk.bf16.mxu0 %vm163_vm1, %v162_v0  ;;  %17 = vst.msk [vmem:[#allocation2] sm:$0xff] %vm16_vm0, %v162_v0  ;;  %18 = vst.msk [vmem:[#allocation2 + $0x8] sm:$0xff] %vm16_vm0, %v162_v0  ;;  %v152_v2 = vld [vmem:[%s198_s1 + $0x8] sm:$0xff]   ;;  %vm121_vm3 = vcmask 519168  }
   0x2   :  { %142 = vmatpush3.bf16.msra.mxu0 %v151_v1  ;;  %v153_v3 = vld [vmem:[%s199_s0] sm:$0xff]  }
   0x3   :  { %143 = vmatprep.subr.bf16.mxu0 %v162_v0 }
   0x6   :  { %144 = vmatpush3.bf16.msra.mxu0 %v152_v2 }
   0x8   :  { %v21_v4 = vld [vmem:[#allocation2] sm:$0xff]  ;;  %v22_v6 = vld [vmem:[#allocation2 + $0x8] sm:$0xff] }
   0x9   :  { %146 = vmatmul.mubr.msk.bf16.vlgmr.msra.gmra.mrb[0].mxu0 %vm44_vm2, %v153_v3 }
  0xdc   :  { %v82_v5 = vpop.f32.mrb[0].mxu0 }
  0xdd   :  { %v89_v7 = vadd.f32 %v82_v5, %v21_v4  ;;  %v147_v8 = vpop.f32.mrb[1].mxu0 }
  0xde   :  { %v85_v9 = vpop.f32.mrb[2].mxu0 }
  0xdf   :  { %92 = vst.msk [vmem:[#allocation2] sm:$0xff] %vm16_vm0, %v89_v7  ;;  %v90_v10 = vadd.f32 %v85_v9, %v22_v6  ;;  %v148_v11 = vpop.f32.mrb[3].mxu0 }
  0xe1   :  { %93 = vst.msk [vmem:[#allocation2 + $0x8] sm:$0xff] %vm16_vm0, %v90_v10 }
  0xe6   :  { %v97_v12 = vld [vmem:[#allocation2] sm:$0xff] }
  0xe7   :  { %v132_v13 = vmul.f32 -1.442695, %v97_v12 }
  0xe8   :  { %v98_v14 = vld [vmem:[#allocation2 + $0x8] sm:$0xff] }
  0xe9   :  { %154 = vpow2.f32 %v132_v13  ;;  %v133_v15 = vmul.f32 -1.442695, %v98_v14 }
  0xeb   :  { %156 = vpow2.f32 %v133_v15 }
  0xf3   :  { %v155_v16 = vpop.eup %154 }
  0xf4   :  { %v105_v17 = vadd.f32 1.0, %v155_v16 }
  0xf5   :  { %v157_v18 = vpop.eup %156 }
  0xf6   :  { %158 = vrcp.f32 %v105_v17  ;;  %v106_v19 = vadd.f32 1.0, %v157_v18 }
  0xf8   :  { %160 = vrcp.f32 %v106_v19 }
 0x100   :  { %v159_v20 = vpop.eup %158 }
 0x101   :  { %v111_v21 = vmul.f32 %v159_v20, %v97_v12 }
 0x102   :  { %v161_v22 = vpop.eup %160 }
 0x103   :  { %v136_v23 = vpack.c.bf16 %v111_v21, %v111_v21  ;;  %v112_v24 = vmul.f32 %v161_v22, %v98_v14 }
 0x105   :  { %122 = vst.msk [vmem:[%s200_s2] sm:$0xf] %vm121_vm3, %v136_v23  ;;  %v137_v25 = vpack.c.bf16 %v112_v24, %v112_v24 }
 0x107   :  { %123 = vst.msk [vmem:[%s200_s2 + $0x4] sm:$0xf] %vm121_vm3, %v137_v25 }

// kernel: treenet_forward.74
= control target key start
LH: loop header
LB: loop body
LE: loop exit
PB: predicated region body
PF: predicated region fallthrough
CT: control target
= control target key end

     0   :  { %vm16_vm0 = vcmask 523264   ;;  %v138_v0 = vmov 0.0   ;;  %vm139_vm1 = vmmov 0   ;;  %vm44_vm2 = vcmask 261120   ;;  %s174_s1 = inlined_call_operand.vmem [shape: bf16[32,64], index: 1, kind: input, shape index: {}]   ;;  %s175_s0 = inlined_call_operand.vmem [shape: bf16[16,32], index: 0, kind: input, shape index: {}]   ;;  %s176_s2 = inlined_call_operand.vmem [shape: bf16[16,64], index: 2, kind: output, shape index: {}]  }
   0x1   :  { %125 = vmatprep.subr.bf16.mxu0 %v138_v0  ;;  %v135_v1 = vld [vmem:[%s174_s1] sm:$0xff]   ;;  %129 = vmatprep.mubr.msk.bf16.mxu0 %vm139_vm1, %v138_v0  ;;  %17 = vst.msk [vmem:[#allocation2] sm:$0xff] %vm16_vm0, %v138_v0  ;;  %18 = vst.msk [vmem:[#allocation2 + $0x8] sm:$0xff] %vm16_vm0, %v138_v0  ;;  %v136_v2 = vld [vmem:[%s174_s1 + $0x8] sm:$0xff]   ;;  %vm107_vm3 = vcmask 519168  }
   0x2   :  { %126 = vmatpush3.bf16.msra.mxu0 %v135_v1  ;;  %v137_v3 = vld [vmem:[%s175_s0] sm:$0xff]  }
   0x3   :  { %127 = vmatprep.subr.bf16.mxu0 %v138_v0 }
   0x6   :  { %128 = vmatpush3.bf16.msra.mxu0 %v136_v2 }
   0x8   :  { %v21_v4 = vld [vmem:[#allocation2] sm:$0xff]  ;;  %v22_v6 = vld [vmem:[#allocation2 + $0x8] sm:$0xff] }
   0x9   :  { %130 = vmatmul.mubr.msk.bf16.vlgmr.msra.gmra.mrb[0].mxu0 %vm44_vm2, %v137_v3 }
  0xdc   :  { %v82_v5 = vpop.f32.mrb[0].mxu0 }
  0xdd   :  { %v89_v7 = vadd.f32 %v82_v5, %v21_v4  ;;  %v131_v8 = vpop.f32.mrb[1].mxu0 }
  0xde   :  { %v85_v9 = vpop.f32.mrb[2].mxu0 }
  0xdf   :  { %92 = vst.msk [vmem:[#allocation2] sm:$0xff] %vm16_vm0, %v89_v7  ;;  %v90_v10 = vadd.f32 %v85_v9, %v22_v6  ;;  %v132_v11 = vpop.f32.mrb[3].mxu0 }
  0xe1   :  { %93 = vst.msk [vmem:[#allocation2 + $0x8] sm:$0xff] %vm16_vm0, %v90_v10 }
  0xe6   :  { %v97_v12 = vld [vmem:[#allocation2] sm:$0xff] }
  0xe7   :  { %v120_v13 = vpack.c.bf16 %v97_v12, %v97_v12 }
  0xe8   :  { %v98_v14 = vld [vmem:[#allocation2 + $0x8] sm:$0xff] }
  0xe9   :  { %108 = vst.msk [vmem:[%s176_s2] sm:$0xf] %vm107_vm3, %v120_v13  ;;  %v121_v15 = vpack.c.bf16 %v98_v14, %v98_v14 }
  0xeb   :  { %109 = vst.msk [vmem:[%s176_s2 + $0x4] sm:$0xf] %vm107_vm3, %v121_v15 }

// kernel: treenet_forward.71
= control target key start
LH: loop header
LB: loop body
LE: loop exit
PB: predicated region body
PF: predicated region fallthrough
CT: control target
= control target key end

     0   :  { %vm19_vm0 = vcmask 261120   ;;  %v131_v0 = vmov 0.0   ;;  %vm132_vm1 = vmmov 0   ;;  %s181_s1 = inlined_call_operand.vmem [shape: bf16[32,32], index: 1, kind: input, shape index: {}]   ;;  %s182_s0 = inlined_call_operand.vmem [shape: bf16[16,32], index: 0, kind: input, shape index: {}]   ;;  %s183_s2 = inlined_call_operand.vmem [shape: f32[16,32], index: 2, kind: input, shape index: {}]   ;;  %s184_s3 = inlined_call_operand.vmem [shape: f32[16,32], index: 3, kind: output, shape index: {}]  }
   0x1   :  { %118 = vmatprep.subr.bf16.mxu0 %v131_v0  ;;  %v128_v1 = vld [vmem:[%s181_s1] sm:$0xff]   ;;  %122 = vmatprep.mubr.msk.bf16.mxu0 %vm132_vm1, %v131_v0  ;;  %20 = vst.msk [vmem:[#allocation2] sm:$0xff] %vm19_vm0, %v131_v0  ;;  %21 = vst.msk [vmem:[#allocation2 + $0x8] sm:$0xff] %vm19_vm0, %v131_v0  ;;  %v129_v2 = vld [vmem:[%s181_s1 + $0x8] sm:$0xff]  }
   0x2   :  { %119 = vmatpush3.bf16.msra.mxu0 %v128_v1  ;;  %v130_v3 = vld [vmem:[%s182_s0] sm:$0xff]   ;;  %v102_v14 = vld [vmem:[%s183_s2 + $0x8] sm:$0xff] }
   0x3   :  { %120 = vmatprep.subr.bf16.mxu0 %v131_v0  ;;  %v101_v12 = vld [vmem:[%s183_s2] sm:$0xff] }
   0x6   :  { %121 = vmatpush3.bf16.msra.mxu0 %v129_v2 }
   0x8   :  { %v24_v4 = vld [vmem:[#allocation2] sm:$0xff]  ;;  %v25_v6 = vld [vmem:[#allocation2 + $0x8] sm:$0xff] }
   0x9   :  { %123 = vmatmul.mubr.msk.bf16.vlgmr.msra.gmra.mrb[0].mxu0 %vm19_vm0, %v130_v3 }
  0xdc   :  { %v85_v5 = vpop.f32.mrb[0].mxu0 }
  0xdd   :  { %v92_v7 = vadd.f32 %v85_v5, %v24_v4  ;;  %v124_v8 = vpop.f32.mrb[1].mxu0 }
  0xde   :  { %v88_v9 = vpop.f32.mrb[2].mxu0 }
  0xdf   :  { %94 = vst.msk [vmem:[#allocation2] sm:$0xff] %vm19_vm0, %v92_v7  ;;  %v93_v10 = vadd.f32 %v88_v9, %v25_v6  ;;  %v125_v11 = vpop.f32.mrb[3].mxu0 }
  0xe1   :  { %95 = vst.msk [vmem:[#allocation2 + $0x8] sm:$0xff] %vm19_vm0, %v93_v10 }
  0xe6   :  { %v99_v13 = vld [vmem:[#allocation2] sm:$0xff] }
  0xe7   :  { %v103_v15 = vadd.f32 %v101_v12, %v99_v13 }
  0xe8   :  { %v100_v16 = vld [vmem:[#allocation2 + $0x8] sm:$0xff] }
  0xe9   :  { %105 = vst.msk [vmem:[%s184_s3] sm:$0xff] %vm19_vm0, %v103_v15  ;;  %v104_v17 = vadd.f32 %v102_v14, %v100_v16 }
  0xeb   :  { %106 = vst.msk [vmem:[%s184_s3 + $0x8] sm:$0xff] %vm19_vm0, %v104_v17 }

// kernel: treenet_forward.70
= control target key start
LH: loop header
LB: loop body
LE: loop exit
PB: predicated region body
PF: predicated region fallthrough
CT: control target
= control target key end

     0   :  { %s979_s24 = smov 0   ;;  %s981_s25 = smov 0   ;;  %s1067_s0 = inlined_call_operand.vmem [shape: bf16[2,4,8,8], index: 0, kind: input, shape index: {}]   ;;  %s1068_s1 = inlined_call_operand.vmem [shape: bf16[2,4,8,8], index: 1, kind: input, shape index: {}]   ;;  %s1069_s2 = inlined_call_operand.vmem [shape: bf16[2,4,8,8], index: 2, kind: input, shape index: {}]   ;;  %s1070_s3 = inlined_call_operand.vmem [shape: f32[8,8], index: 3, kind: input, shape index: {}, may-alias: {3,5}]   ;;  %s1071_s4 = inlined_call_operand.vmem [shape: f32[8,8], index: 4, kind: input, shape index: {}, may-alias: {4,6}]   ;;  %s1072_s5 = inlined_call_operand.vmem [shape: f32[8,8], index: 5, kind: input, shape index: {}, may-alias: {3,5}]   ;;  %s1073_s6 = inlined_call_operand.vmem [shape: f32[8,8], index: 6, kind: input, shape index: {}, may-alias: {4,6}]   ;;  %s1074_s7 = inlined_call_operand.vmem [shape: bf16[2,4,8,8], index: 7, kind: output, shape index: {}]  }
   0x1   :  { %s983_s26 = smov 0   ;;  %s985_s27 = smov 0  }
   0x2   :  { %s987_s28 = smov 0  }
   0x3 LB: > { %s32_s29 = sadd.s32 1, %s923_s26  ;;  %s36_s30 = sadd.s32 1, %s927_s27  ;;  %s931_s28 = sphi %s987_s28, %s17_s28   ;;  %s927_s27 = sphi %s985_s27, %s1078_s27   ;;  %s923_s26 = sphi %s983_s26, %s1077_s26   ;;  %s919_s25 = sphi %s981_s25, %s1076_s25   ;;  %s915_s24 = sphi %s979_s24, %s1075_s24  }
   0x4   : > { %p34_p0 = scmp.ge.s32.totalorder %s32_s29, 4  ;;  %p805_p1 = scmp.ge.s32.totalorder %s931_s28, 1 }
   0x5   : > { %p321_p2 = scmp.lt.s32.totalorder %s931_s28, 9 }
   0x6   : > { %s1080_s29 = smov (%p34_p0, %s32_s29), 0  ;;  %s1082_s30 = smov (!%p34_p0, %s36_s30), %s927_s27 }
   0x7   : > { %p322_p3 = pnand %p805_p1, %p321_p2  ;;  %p38_p4 = scmp.ge.s32.totalorder %s1082_s30, 2 }
   0x8   : > { %p389_p5 = scmp.lt.s32.totalorder (!%p322_p3), %s919_s25, 1  ;;  %p391_p6 = scmp.lt.s32.totalorder (!%p322_p3), %s915_s24, 3  ;;  %vm463_vm0 = vcmask (!%p322_p3), 64512   ;;  %v933_v4 = vmov (!%p322_p3), 0.0   ;;  %vm936_vm1 = vmmov (!%p322_p3), 0   ;;  %v467_v6 = vld [vmem:[%s1072_s5] sm:$0xff] (!%p322_p3)  ;;  %v530_v29 = vlaneseq (!%p322_p3) }
   0x9   : > { %s1084_s30 = smov (%p38_p4, %s1082_s30), 0  ;;  %325 = sbr.rel (%p322_p3) target bundleno = 961 (0x3c1), region = 48 }
   0xa   : > { %822 = vmatprep.subr.bf16.mxu0 (!%p322_p3), %v933_v4  ;;  %464 = vst.msk [vmem:[#allocation5] sm:$0xff] (!%p322_p3), %vm463_vm0, %v933_v4  ;;  %828 = vmatprep.subr.bf16.mxu1 (!%p322_p3), %v933_v4  ;;  %s934_s17 = smov (!%p322_p3), 4   ;;  %s935_s18 = smov (!%p322_p3), 124   ;;  %vm451_vm2 = vcmask (!%p322_p3), 31744   ;;  %v478_v10 = vld [vmem:[%s1073_s6] sm:$0xff] (!%p322_p3)  ;;  %vm458_vm3 = vcmask (!%p322_p3), 60416  }
   0xb   : > { %824 = vmatprep.mubr.msk.bf16.mxu0 (!%p322_p3), %vm936_vm1, %v933_v4  ;;  %830 = vmatprep.mubr.msk.bf16.mxu1 (!%p322_p3), %vm936_vm1, %v933_v4  ;;  %v442_v11 = vld [vmem:[%s1070_s3] sm:$0xff] (!%p322_p3)  ;;  %vm460_vm4 = vcmask (!%p322_p3), 7168   ;;  %v937_v28 = vmov (!%p322_p3), -1e+30   ;;  %v531_v30 = vshrl.u32 (!%p322_p3), %v530_v29, 7  ;;  %v533_v31 = vand.u32 (!%p322_p3), 127, %v530_v29 }
   0xc   : > { %v453_v15 = vld [vmem:[%s1071_s4] sm:$0xff] (!%p322_p3)  ;;  %461 = vst.msk [vmem:[#allocation3] sm:$0xff] (!%p322_p3), %vm460_vm4, %v937_v28  ;;  %462 = vst.msk [vmem:[#allocation4] sm:$0xff] (!%p322_p3), %vm460_vm4, %v933_v4  ;;  %v938_v38 = vmov (!%p322_p3), 0   ;;  %vm575_vm6 = vcmask (!%p322_p3), 1043456  }
   0xd   : > { %vm537_vm5 = vcmp.le.s32.totalorder (!%p322_p3), %v533_v31, %v531_v30  ;;  %885 = vset.pattern.permute.xlu0 (!%p322_p3), %v938_v38  ;;  %886 = vset.pattern.permute.xlu1 (!%p322_p3), %v938_v38 }
  0x10   : > { %s1086_s25 = smov (!%p389_p5, %s919_s25), 1  ;;  %s1088_s24 = smov (!%p391_p6, %s915_s24), 3 }
  0x11   : > { %s806_s8 = sshll.u32 %s1086_s25, 2  ;;  %v563_v59 = vld [vmem:[#allocation5] sm:$0xff] }
  0x12   : > { %s394_s9 = sadd.s32 %s806_s8, %s1088_s24 }
  0x13   : > { %s1009_s10 = sshll.u32 %s394_s9, 2  ;;  %v539_v39 = vld [vmem:[#allocation3] sm:$0xff]  ;;  %v555_v53 = vld [vmem:[#allocation4] sm:$0xff] }
  0x14   : > { %s396_s13 = scalar_lea.vmem %s1067_s0, %s1009_s10  ;;  %s407_s16 = scalar_lea.vmem %s1068_s1, %s1009_s10 }
  0x15   : > { %v440_v0 = vld [vmem:[%s396_s13] sm:$0xf]  ;;  %s418_s12 = scalar_lea.vmem %s1069_s2, %s1009_s10  ;;  %s434_s15 = scalar_lea.vmem %s1074_s7, %s1009_s10 }
  0x16   : > { %v465_v1 = vld [vmem:[%s407_s16] sm:$0xf]  ;;  %v441_v2 = vunpack.c.l.bf16 %v440_v0 }
  0x17   : > { %v466_v3 = vunpack.c.l.bf16 %v465_v1  ;;  %v571_v44 = vld [vmem:[%s418_s12] sm:$0xf] }
  0x18   : > { %v443_v18 = vmul.f32 %v442_v11, %v441_v2  ;;  %v577_v45 = vsel %vm575_vm6, %v571_v44, 0 }
  0x19   : > { %v880_v5 = vpack.i.bf16 %v466_v3, %v441_v2  ;;  %473 = vrot.lane.b32.xlu1 %v466_v3, %s934_s17  ;;  %v468_v12 = vmul.f32 %v467_v6, %v466_v3  ;;  %829 = vmatpush3.bf16.msra.mxu1 %v577_v45 }
  0x1b   : > { %881 = vrot.lane.b32.xlu0 %v880_v5, %s935_s18 }
  0x1f   : > { %448 = vrot.lane.b32.xlu0 %v441_v2, %s934_s17 }
  0x8b   : > { %v474_v8 = vpop.permute.xlu1 %473 }
  0x8d   : > { %v882_v7 = vpop.permute.xlu0 %881 }
  0x8e   : > { %v884_v9 = vunpack.i.h.bf16 %v882_v7  ;;  %v883_v13 = vunpack.i.l.bf16 %v882_v7 }
  0x90   : > { %v477_v14 = vsel %vm451_vm2, %v884_v9, %v474_v8 }
  0x91   : > { %v479_v16 = vmul.f32 %v478_v10, %v477_v14  ;;  %v449_v17 = vpop.permute.xlu0 %448 }
  0x92   : > { %v452_v19 = vsel %vm451_vm2, %v883_v13, %v449_v17 }
  0x93   : > { %v454_v20 = vmul.f32 %v453_v15, %v452_v19  ;;  %v480_v21 = vadd.f32 %v479_v16, %v468_v12 }
  0x95   : > { %v455_v22 = vadd.f32 %v454_v20, %v443_v18  ;;  %v481_v23 = vpack.c.bf16 %v480_v21, %v480_v21 }
  0x97   : > { %v456_v24 = vmul.f32 0.35355338, %v455_v22  ;;  %v488_v25 = vsel %vm463_vm0, %v481_v23, 0 }
  0x98   : > { %823 = vmatpush3.bf16.xpose.msra.mxu0 %v488_v25 }
  0x99   : > { %v457_v26 = vpack.c.bf16 %v456_v24, %v456_v24 }
  0x9b   : > { %459 = vst.msk [vmem:[#allocation2] sm:$0xf] %vm458_vm3, %v457_v26 }
  0xa2   : > { %v482_v27 = vld [vmem:[#allocation2] sm:$0xf] }
  0xa3   : > { %825 = vmatmul.mubr.msk.bf16.vlgmr.msra.gmra.mrb[0].mxu0 %vm463_vm0, %v482_v27 }
 0x176   : > { %v524_v32 = vpop.f32.mrb[0].mxu0 }
 0x177   : > { %v538_v33 = vsel %vm537_vm5, %v524_v32, -1e+30  ;;  %v826_v34 = vpop.f32.mrb[1].mxu0 }
 0x178   : > { %v527_v35 = vpop.f32.mrb[2].mxu0  ;;  %v540_v36 = vsel %vm463_vm0, %v538_v33, -inf }
 0x179   : > { %541 = vmax.xlane.f32.xlu1 %v540_v36  ;;  %v827_v37 = vpop.f32.mrb[3].mxu0 }
 0x206   : > { %v542_v40 = vpop.xlane.xlu1 %541 }
 0x207   : > { %v543_v41 = vmax.f32 %v539_v39, %v542_v40 }
 0x209   : > { %v544_v42 = vsub.f32 %v539_v39, %v543_v41  ;;  %621 = vst.msk [vmem:[#allocation3] sm:$0xff] %vm460_vm4, %v543_v41  ;;  %549 = vperm.xlu0 %885, %v543_v41  }
 0x20b   : > { %v545_v43 = vmul.f32 1.442695, %v544_v42 }
 0x20d   : > { %887 = vpow2.f32 %v545_v43 }
 0x217   : > { %v888_v46 = vpop.eup %887 }
 0x218   : > { %566 = vperm.xlu1 %886, %v888_v46   ;;  %v556_v54 = vmul.f32 %v888_v46, %v555_v53 }
 0x288   : > { %v550_v47 = vpop.permute.xlu0 %549 }
 0x289   : > { %v552_v48 = vsub.f32 %v538_v33, %v550_v47 }
 0x28b   : > { %v553_v49 = vmul.f32 1.442695, %v552_v48 }
 0x28d   : > { %889 = vpow2.f32 %v553_v49 }
 0x297   : > { %v890_v50 = vpop.eup %889  ;;  %v567_v60 = vpop.permute.xlu1 %566 }
 0x298   : > { %v557_v51 = vsel %vm463_vm0, %v890_v50, 0.0  ;;  %v570_v52 = vpack.c.bf16 %v890_v50, %v890_v50  ;;  %v569_v61 = vmul.f32 %v567_v60, %v563_v59 }
 0x299   : > { %558 = vadd.xlane.f32.xlu0 %v557_v51 }
 0x29a   : > { %831 = vmatmul.mubr.msk.bf16.vlgmr.msra.gmra.mrb[0].mxu1 %vm463_vm0, %v570_v52 }
 0x326   : > { %v559_v55 = vpop.xlane.xlu0 %558 }
 0x327   : > { %v560_v56 = vadd.f32 %v559_v55, %v556_v54 }
 0x329   : > { %562 = vst.msk [vmem:[#allocation4] sm:$0xff] %vm460_vm4, %v560_v56 }
 0x330   : > { %v626_v57 = vld [vmem:[#allocation4] sm:$0xff] }
 0x331   : > { %891 = vrcp.f32 %v626_v57 }
 0x33b   : > { %v892_v58 = vpop.eup %891 }
 0x33c   : > { %630 = vperm.xlu0 %885, %v892_v58  }
 0x36d   : > { %v613_v62 = vpop.f32.mrb[0].mxu1 }
 0x36e   : > { %v619_v63 = vadd.f32 %v613_v62, %v569_v61  ;;  %v832_v0 = vpop.f32.mrb[1].mxu1 }
 0x36f   : > { %v616_v1 = vpop.f32.mrb[2].mxu1 }
 0x370   : > { %620 = vst.msk [vmem:[#allocation5] sm:$0xff] %vm463_vm0, %v619_v63  ;;  %v833_v2 = vpop.f32.mrb[3].mxu1 }
 0x377   : > { %v625_v3 = vld [vmem:[#allocation5] sm:$0xff] }
 0x3bb   : > { %v631_v4 = vpop.permute.xlu0 %630 }
 0x3bc   : > { %v633_v5 = vmul.f32 %v631_v4, %v625_v3 }
 0x3be   : > { %v634_v6 = vpack.c.bf16 %v633_v5, %v633_v5 }
 0x3c0   : > { %636 = vst.msk [vmem:[%s434_s15] sm:$0xf] %vm458_vm3, %v634_v6 }
 0x3c1 PF: > { %s17_s28 = sadd.s32 1, %s931_s28   ;;  %s1075_s24 = smov %s923_s26 }
 0x3c2   : > { %p14_p7 = scmp.ge.s32.totalorder %s17_s28, 10   ;;  %s1076_s25 = smov %s927_s27 }
 0x3c3   : > { %s1077_s26 = smov %s1080_s29  ;;  %s1078_s27 = smov %s1084_s30 }
 0x3c4   :  { %16 = sbr.rel (!%p14_p7) target bundleno = 3 (0x3), region = 98 }

// kernel: treenet_forward.75
= control target key start
LH: loop header
LB: loop body
LE: loop exit
PB: predicated region body
PF: predicated region fallthrough
CT: control target
= control target key end

     0   :  { %vm22_vm0 = vcmask 261120   ;;  %v171_v0 = vmov 0.0   ;;  %vm172_vm1 = vmmov 0   ;;  %vm70_vm2 = vcmask 523264   ;;  %s234_s2 = inlined_call_operand.vmem [shape: bf16[64,32], index: 2, kind: input, shape index: {}]   ;;  %s235_s0 = inlined_call_operand.vmem [shape: bf16[16,64], index: 0, kind: input, shape index: {}]   ;;  %s236_s1 = inlined_call_operand.vmem [shape: bf16[16,64], index: 1, kind: input, shape index: {}]   ;;  %s237_s3 = inlined_call_operand.vmem [shape: f32[16,32], index: 3, kind: input, shape index: {}]   ;;  %s238_s4 = inlined_call_operand.vmem [shape: f32[16,32], index: 4, kind: output, shape index: {}]  }
   0x1   :  { %153 = vmatprep.subr.bf16.mxu0 %v171_v0  ;;  %v167_v1 = vld [vmem:[%s234_s2] sm:$0xff]   ;;  %161 = vmatprep.mubr.msk.bf16.mxu0 %vm172_vm1, %v171_v0  ;;  %23 = vst.msk [vmem:[#allocation2] sm:$0xff] %vm22_vm0, %v171_v0  ;;  %24 = vst.msk [vmem:[#allocation2 + $0x8] sm:$0xff] %vm22_vm0, %v171_v0  ;;  %v168_v2 = vld [vmem:[%s234_s2 + $0x8] sm:$0xff]  }
   0x2   :  { %154 = vmatpush3.bf16.msra.mxu0 %v167_v1  ;;  %v141_v3 = vld [vmem:[%s235_s0] sm:$0xff]   ;;  %v169_v9 = vld [vmem:[%s234_s2 + $0x10] sm:$0xff]   ;;  %v170_v12 = vld [vmem:[%s234_s2 + $0x18] sm:$0xff]  }
   0x3   :  { %155 = vmatprep.subr.bf16.mxu0 %v171_v0  ;;  %v145_v4 = vld [vmem:[%s236_s1] sm:$0xff]   ;;  %v142_v5 = vunpack.c.l.bf16 %v141_v3  ;;  %v143_v6 = vunpack.c.h.bf16 %v141_v3  ;;  %v126_v24 = vld [vmem:[%s237_s3 + $0x8] sm:$0xff] }
   0x4   :  { %v146_v7 = vunpack.c.l.bf16 %v145_v4  ;;  %v147_v8 = vunpack.c.h.bf16 %v145_v4  ;;  %v125_v22 = vld [vmem:[%s237_s3] sm:$0xff] }
   0x6   :  { %156 = vmatpush3.bf16.msra.mxu0 %v168_v2  ;;  %v33_v10 = vmul.f32 %v146_v7, %v142_v5  ;;  %v34_v11 = vmul.f32 %v147_v8, %v143_v6 }
   0x7   :  { %157 = vmatprep.subr.bf16.mxu0 %v171_v0 }
   0x8   :  { %v35_v13 = vpack.c.bf16 %v34_v11, %v33_v10  ;;  %v36_v14 = vld [vmem:[#allocation2] sm:$0xff]  ;;  %v37_v16 = vld [vmem:[#allocation2 + $0x8] sm:$0xff] }
   0xa   :  { %158 = vmatpush3.bf16.msra.mxu0 %v169_v9 }
   0xb   :  { %159 = vmatprep.subr.bf16.mxu0 %v171_v0 }
   0xe   :  { %160 = vmatpush3.bf16.msra.mxu0 %v170_v12 }
  0x11   :  { %162 = vmatmul.mubr.msk.bf16.vlgmr.msra.gmra.mrb[0].mxu0 %vm70_vm2, %v35_v13 }
  0xe4   :  { %v108_v15 = vpop.f32.mrb[0].mxu0 }
  0xe5   :  { %v115_v17 = vadd.f32 %v108_v15, %v36_v14  ;;  %v163_v18 = vpop.f32.mrb[1].mxu0 }
  0xe6   :  { %v111_v19 = vpop.f32.mrb[2].mxu0 }
  0xe7   :  { %118 = vst.msk [vmem:[#allocation2] sm:$0xff] %vm22_vm0, %v115_v17  ;;  %v116_v20 = vadd.f32 %v111_v19, %v37_v16  ;;  %v164_v21 = vpop.f32.mrb[3].mxu0 }
  0xe9   :  { %119 = vst.msk [vmem:[#allocation2 + $0x8] sm:$0xff] %vm22_vm0, %v116_v20 }
  0xee   :  { %v123_v23 = vld [vmem:[#allocation2] sm:$0xff] }
  0xef   :  { %v127_v25 = vadd.f32 %v125_v22, %v123_v23 }
  0xf0   :  { %v124_v26 = vld [vmem:[#allocation2 + $0x8] sm:$0xff] }
  0xf1   :  { %129 = vst.msk [vmem:[%s238_s4] sm:$0xff] %vm22_vm0, %v127_v25  ;;  %v128_v27 = vadd.f32 %v126_v24, %v124_v26 }
  0xf3   :  { %130 = vst.msk [vmem:[%s238_s4 + $0x8] sm:$0xff] %vm22_vm0, %v128_v27 }

// kernel: treenet_forward.135
= control target key start
LH: loop header
LB: loop body
LE: loop exit
PB: predicated region body
PF: predicated region fallthrough
CT: control target
= control target key end

     0   :  { %v217_v1 = vmov 0.0   ;;  %vm218_vm0 = vmmov 0   ;;  %s270_s0 = inlined_call_operand.vmem [shape: bf16[16,96], index: 0, kind: input, shape index: {}]   ;;  %s271_s1 = inlined_call_operand.vmem [shape: bf16[96,128], index: 1, kind: input, shape index: {}]   ;;  %s272_s2 = inlined_call_operand.hbm [shape: f32[16,128], index: 2, kind: output, shape index: {}]  }
   0x1   :  { %v186_v0 = vld [vmem:[%s271_s1] sm:$0xff]   ;;  %165 = vmatprep.subr.bf16.mxu0 %v217_v1  ;;  %v187_v2 = vld [vmem:[%s271_s1 + $0x8] sm:$0xff]   ;;  %177 = vmatprep.mubr.msk.bf16.mxu0 %vm218_vm0, %v217_v1  ;;  %v188_v3 = vld [vmem:[%s271_s1 + $0x10] sm:$0xff]  }
   0x2   :  { %166 = vmatpush3.bf16.msra.mxu0 %v186_v0 }
   0x3   :  { %167 = vmatprep.subr.bf16.mxu0 %v217_v1 }
   0x6   :  { %168 = vmatpush3.bf16.msra.mxu0 %v187_v2 }
   0x7   :  { %169 = vmatprep.subr.bf16.mxu0 %v217_v1 }
   0x8   :  { %7 = vsyncpa [#allocation4], 0  ;;  %v189_v4 = vld [vmem:[%s271_s1 + $0x18] sm:$0xff]   ;;  %v190_v5 = vld [vmem:[%s271_s1 + $0x20] sm:$0xff]   ;;  %vm76_vm1 = vcmask 785408   ;;  %s219_s23 = smov [#allocation3]  }
   0x9   :  { %v191_v6 = vld [vmem:[%s271_s1 + $0x28] sm:$0xff]   ;;  %v192_v7 = vld [vmem:[%s270_s0] sm:$0xff]   ;;  %s139_s24 = sshll.u32 %s219_s23, 4  ;;  %s140_s24 = int_to_ptr.vmem [resolvable:$true] %s139_s24 }
   0xa   :  { %170 = vmatpush3.bf16.msra.mxu0 %v188_v3  ;;  %s193_s1 = scalar_lea.vmem %s140_s24, 256  ;;  %p198_p1 = scmp.lt.s32.totalorder %s140_s24, %s140_s24 }
   0xb   :  { %171 = vmatprep.subr.bf16.mxu0 %v217_v1  ;;  %p194_p0 = scmp.ne.s32.totalorder %s140_s24, %s193_s1  ;;  %p199_p2 = scmp.lt.s32.totalorder %s193_s1, %s193_s1 }
   0xd   :  { %p200_p3 = por %p199_p2, %p198_p1 }
   0xe   :  { %172 = vmatpush3.bf16.msra.mxu0 %v189_v4 }
   0xf   :  { %173 = vmatprep.subr.bf16.mxu0 %v217_v1  ;;  %p201_p4 = pnand %p200_p3, %p194_p0 }
  0x12   :  { %174 = vmatpush3.bf16.msra.mxu0 %v190_v5 }
  0x13   :  { %175 = vmatprep.subr.bf16.mxu0 %v217_v1 }
  0x16   :  { %176 = vmatpush3.bf16.msra.mxu0 %v191_v6 }
  0x19   :  { %178 = vmatmul.mubr.msk.bf16.vlgmr.msra.gmra.mrb[0].mxu0 %vm76_vm1, %v192_v7 }
  0xec   :  { %v114_v8 = vpop.f32.mrb[0].mxu0 }
  0xed   :  { %v130_v9 = vmul.f32 0.33333334, %v114_v8  ;;  %v179_v10 = vpop.f32.mrb[1].mxu0 }
  0xee   :  { %v117_v11 = vpop.f32.mrb[2].mxu0 }
  0xef   :  { %132 = vst [vmem:[#allocation3] sm:$0xff] %v130_v9  ;;  %v131_v12 = vmul.f32 0.33333334, %v117_v11  ;;  %v180_v13 = vpop.f32.mrb[3].mxu0 }
  0xf1   :  { %133 = vst [vmem:[#allocation3 + $0x8] sm:$0xff] %v131_v12 }
  0xf2   :  { %204 = shalt.err (!%p201_p4)
}
  0xf3   :  { %s205_s26 = scalar_lea.hbm %s272_s2, 256 }
  0xf4   :  { %p206_p5 = scmp.ne.s32.totalorder %s272_s2, %s205_s26  ;;  %p209_p6 = scmp.lt.u32.totalorder %s205_s26, %s272_s2 }
  0xf6   :  { %p211_p7 = pnand %p209_p6, %p206_p5 }
  0xf8   :  { %214 = shalt.err (!%p211_p7)
}
  0xf9   :  { %s220_s3 = smov 128   ;;  %s221_s4 = smov 8  }
  0xfa   :  { %145 = dma.vmem_to_hbm [thread:$0]  %s140_s24, 256, %s272_s2, [#allocation4], %s220_s3, %s220_s3, %s221_s4  }
  0xfb   :  { %215 = dma.done.wait [#allocation4], 256  }
  0xfc   :  { %216 = vsyncadd [#allocation4], 4294967040 }
  0xfd   :  { %149 = vsyncpa [#allocation4], 1 }

</bundles_post_ra>
